<compile_context>
chip_gen: v7x
topology: tpu7x:2x2x1
jax: 0.10.0
libtpu: 0.0.40
codegen_flags: <defaults>
</compile_context>

<pallas_src>
import math

import jax
import jax.numpy as jnp
from jax.experimental import pallas as pl
from jax.experimental.pallas import tpu as pltpu


# ---------------------------------------------------------------------------
# Kernels
# ---------------------------------------------------------------------------
def input_proj_kernel(x_ref, wx_ref, bx_ref, gx_ref):
    """gx = x @ [Wzx|Wrx|Whx] + [bz|br|bh] for one (TB, T_BLOCK) tile."""
    tb, t_block, in_dim = x_ref.shape
    x = x_ref[...].reshape(tb * t_block, in_dim).astype(jnp.bfloat16)
    g = jnp.dot(x, wx_ref[...], preferred_element_type=jnp.float32) + bx_ref[...]
    gx_ref[...] = g.reshape(tb, t_block, gx_ref.shape[-1])


def gru_recurrent_kernel(gx_ref, wzr_ref, whh_ref, out_ref, hfin_ref, h_scratch):
    """Sequential GRU recurrence over T_BLOCK timesteps per grid step."""
    hidden = whh_ref.shape[0]
    t_block = gx_ref.shape[1]
    t = pl.program_id(1)

    # h_0 = zeros; state stays resident in VMEM scratch across the time axis
    # (re-initialized whenever a new batch tile starts).
    @pl.when(t == 0)
    def _():
        h_scratch[...] = jnp.zeros_like(h_scratch)

    gx = gx_ref[...]        # (TB, T_BLOCK, 3H) f32: x-projections + all biases
    wzr = wzr_ref[...]      # (H, 2H)  bf16 : [Wzh | Wrh]
    whh = whh_ref[...]      # (H, H)   bf16
    h = h_scratch[...]      # (TB, H)  f32 recurrent state

    for i in range(t_block):            # fully unrolled in-kernel time loop
        g = gx[:, i, :]                                             # (TB, 3H)
        zr = jnp.dot(h.astype(jnp.bfloat16), wzr,
                     preferred_element_type=jnp.float32)            # (TB, 2H)
        z = jax.nn.sigmoid(g[:, :hidden] + zr[:, :hidden])
        r = jax.nn.sigmoid(g[:, hidden:2 * hidden] + zr[:, hidden:])
        hh = jnp.tanh(g[:, 2 * hidden:]
                      + jnp.dot((r * h).astype(jnp.bfloat16), whh,
                                preferred_element_type=jnp.float32))
        # h_next = (1 - z) * h + z * hh, written with one fewer vector op.
        h = h + z * (hh - h)
        out_ref[:, i:i + 1, :] = h[:, None, :].astype(out_ref.dtype)

    h_scratch[...] = h
    hfin_ref[...] = h.astype(hfin_ref.dtype)   # resident; written back at end


# ---------------------------------------------------------------------------
# Wrapper
# ---------------------------------------------------------------------------
def _pick_batch_tile(batch):
    # >1 batch tiles on the leading "parallel" axis lets v7x's two TensorCores
    # run independent batch shards of the recurrence.
    for tb in (128, 64, 32, 16, 8):
        if batch > tb and batch % tb == 0:
            return tb
    return batch


def _pick_time_block(seq):
    # Several timesteps per sequential grid step to amortize per-step pipeline
    # overhead.  (Second-to-last block dim must be a multiple of 8 or full.)
    if seq <= 32:
        return seq
    for tb in (32, 16, 8):
        if seq % tb == 0:
            return tb
    return seq


@jax.jit
def gru_forward(xs, params):
    """xs: (batch, seq, input_size) float32.  Returns (outputs, h_final)."""
    B, S, I = xs.shape
    H = params["wzh"].shape[0]
    H3, H2 = 3 * H, 2 * H

    # Fused weight layout (built once, outside the recurrence), bf16 for MXU.
    wx = jnp.concatenate([params["wzx"], params["wrx"], params["whx"]], axis=1)
    bx = jnp.concatenate([params["bz"], params["br"], params["bh"]], axis=1)
    wzr = jnp.concatenate([params["wzh"], params["wrh"]], axis=1)
    wx = wx.astype(jnp.bfloat16)                  # (I, 3H)
    wzr = wzr.astype(jnp.bfloat16)                # (H, 2H)
    whh = params["whh"].astype(jnp.bfloat16)      # (H, H)

    TB = _pick_batch_tile(B)
    T_BLOCK = _pick_time_block(S)
    n_b, n_t = B // TB, S // T_BLOCK

    # ---- 1) parallel input projection: gx = xs @ Wx + b  -> (B, S, 3H) ----
    gx = pl.pallas_call(
        input_proj_kernel,
        out_shape=jax.ShapeDtypeStruct((B, S, H3), jnp.float32),
        grid_spec=pltpu.PrefetchScalarGridSpec(
            num_scalar_prefetch=0,
            grid=(n_b, n_t),
            in_specs=[
                pl.BlockSpec((TB, T_BLOCK, I), lambda b, t: (b, t, 0)),
                pl.BlockSpec((I, H3), lambda b, t: (0, 0)),
                pl.BlockSpec((1, H3), lambda b, t: (0, 0)),
            ],
            out_specs=pl.BlockSpec((TB, T_BLOCK, H3), lambda b, t: (b, t, 0)),
        ),
        compiler_params=pltpu.CompilerParams(
            dimension_semantics=("parallel", "parallel")),
    )(xs, wx, bx)

    # ---- 2) sequential recurrence over time (batch axis parallel) ----------
    outputs, h_final = pl.pallas_call(
        gru_recurrent_kernel,
        out_shape=(jax.ShapeDtypeStruct((B, S, H), jnp.float32),
                   jax.ShapeDtypeStruct((B, H), jnp.float32)),
        grid_spec=pltpu.PrefetchScalarGridSpec(
            num_scalar_prefetch=0,
            grid=(n_b, n_t),
            in_specs=[
                pl.BlockSpec((TB, T_BLOCK, H3), lambda b, t: (b, t, 0)),
                pl.BlockSpec((H, H2), lambda b, t: (0, 0)),
                pl.BlockSpec((H, H), lambda b, t: (0, 0)),
            ],
            out_specs=(
                pl.BlockSpec((TB, T_BLOCK, H), lambda b, t: (b, t, 0)),
                pl.BlockSpec((TB, H), lambda b, t: (b, 0)),
            ),
            scratch_shapes=[pltpu.VMEM((TB, H), jnp.float32)],
        ),
        compiler_params=pltpu.CompilerParams(
            # time axis carries the recurrence -> "arbitrary"; batch is parallel
            dimension_semantics=("parallel", "arbitrary")),
    )(gx, wzr, whh)

    return outputs, h_final


# ---------------------------------------------------------------------------
# Params & references
# ---------------------------------------------------------------------------
def init_params(key, input_size, hidden_size):
    """Mirrors nn.Linear(input+hidden, hidden) default init (+/- 1/sqrt(fan_in)),
    with the gate weights pre-split into x-part / h-part and pre-transposed."""
    fan_in = input_size + hidden_size
    bound = 1.0 / math.sqrt(fan_in)
    keys = jax.random.split(key, 9)
    u = lambda k, shape: jax.random.uniform(
        k, shape, dtype=jnp.float32, minval=-bound, maxval=bound)
    return {
        "wzx": u(keys[0], (input_size, hidden_size)),
        "wzh": u(keys[1], (hidden_size, hidden_size)),
        "bz":  u(keys[2], (1, hidden_size)),
        "wrx": u(keys[3], (input_size, hidden_size)),
        "wrh": u(keys[4], (hidden_size, hidden_size)),
        "br":  u(keys[5], (1, hidden_size)),
        "whx": u(keys[6], (input_size, hidden_size)),
        "whh": u(keys[7], (hidden_size, hidden_size)),
        "bh":  u(keys[8], (1, hidden_size)),
    }


def gru_reference(xs, params, matmul_dtype=jnp.float32):
    """Pure-JAX reference of the module's forward pass.  matmul_dtype lets us
    also build a bf16-matmul / f32-state reference matching the kernel."""
    B, S, _ = xs.shape
    H = params["wzh"].shape[0]

    def mm(a, w):
        return jnp.dot(a.astype(matmul_dtype), w.astype(matmul_dtype),
                       preferred_element_type=jnp.float32)

    h = jnp.zeros((B, H), jnp.float32)
    outs = []
    for t in range(S):
        x = xs[:, t, :]
        z = jax.nn.sigmoid(mm(x, params["wzx"]) + mm(h, params["wzh"]) + params["bz"])
        r = jax.nn.sigmoid(mm(x, params["wrx"]) + mm(h, params["wrh"]) + params["br"])
        hh = jnp.tanh(mm(x, params["whx"]) + mm(r * h, params["whh"]) + params["bh"])
        h = (1.0 - z) * h + z * hh
        outs.append(h[:, None, :])
    return jnp.concatenate(outs, axis=1), h


# ---------------------------------------------------------------------------
if __name__ == "__main__":
    batch, seq_len, input_size, hidden_size = 2, 8, 16, 32

    key = jax.random.PRNGKey(0)
    k_param, k_x = jax.random.split(key)
    params = init_params(k_param, input_size, hidden_size)
    xs = jax.random.normal(k_x, (batch, seq_len, input_size), dtype=jnp.float32)

    t_out, h_final = jax.block_until_ready(gru_forward(xs, params))

    assert t_out.shape == (batch, seq_len, hidden_size)
    assert h_final.shape == (batch, hidden_size)

    # Tight check vs. a reference using the same bf16-matmul / f32-state math.
    t_r16, h_r16 = gru_reference(xs, params, jnp.bfloat16)
    assert jnp.allclose(t_out, t_r16, atol=2e-3, rtol=2e-3)
    assert jnp.allclose(h_final, h_r16, atol=2e-3, rtol=2e-3)

    # Loose check vs. the exact f32 module semantics (bf16 MXU operands).
    t_r32, h_r32 = gru_reference(xs, params, jnp.float32)
    assert jnp.allclose(t_out, t_r32, atol=5e-2, rtol=5e-2)
    assert jnp.allclose(h_final, h_r32, atol=5e-2, rtol=5e-2)

    print("KERNEL_OK")
</pallas_src>

<mosaic_0001>
module attributes {stable_mosaic.version = 11 : i64} {
  func.func @input_proj_kernel(%arg0: i32, %arg1: i32, %arg2: memref<2x8x16xf32, #tpu.memory_space<vmem>>, %arg3: memref<16x96xbf16, #tpu.memory_space<vmem>>, %arg4: memref<1x96xf32, #tpu.memory_space<vmem>>, %arg5: memref<2x8x96xf32, #tpu.memory_space<vmem>>) attributes {dimension_semantics = [#tpu.dimension_semantics<parallel>, #tpu.dimension_semantics<parallel>], iteration_bounds = array<i64: 1, 1>, scalar_prefetch = 0 : i64, scratch_operands = 0 : i64, tpu.core_type = #tpu.core_type<tc>, window_params = [{transform_indices = @transform_0, window_bounds = array<i64: 2, 8, 16>}, {pipeline_mode = #tpu.pipeline_mode<synchronous>, transform_indices = @transform_1, window_bounds = array<i64: 16, 96>}, {pipeline_mode = #tpu.pipeline_mode<synchronous>, transform_indices = @transform_2, window_bounds = array<i64: 1, 96>}, {transform_indices = @transform_3, window_bounds = array<i64: 2, 8, 96>}]} {
    %c0 = arith.constant 0 : index
    %c0_0 = arith.constant 0 : index
    %c0_1 = arith.constant 0 : index
    %0 = vector.load %arg2[%c0, %c0_0, %c0_1] : memref<2x8x16xf32, #tpu.memory_space<vmem>>, vector<2x8x16xf32>
    %1 = vector.shape_cast %0 : vector<2x8x16xf32> to vector<16x16xf32>
    %2 = arith.truncf %1 : vector<16x16xf32> to vector<16x16xbf16>
    %c0_2 = arith.constant 0 : index
    %c0_3 = arith.constant 0 : index
    %3 = vector.load %arg3[%c0_2, %c0_3] : memref<16x96xbf16, #tpu.memory_space<vmem>>, vector<16x96xbf16>
    %cst = arith.constant dense<0.000000e+00> : vector<16x96xf32>
    %4 = tpu.matmul %2, %3, %cst {dimension_numbers = #tpu.dot_dimension_numbers<[1], [0], [0], [1], [0, 0, 1, 1], [], []>} : vector<16x16xbf16>, vector<16x96xbf16>, vector<16x96xf32> -> vector<16x96xf32>
    %c0_4 = arith.constant 0 : index
    %c0_5 = arith.constant 0 : index
    %5 = vector.load %arg4[%c0_4, %c0_5] : memref<1x96xf32, #tpu.memory_space<vmem>>, vector<1x96xf32>
    %6 = vector.broadcast %5 : vector<1x96xf32> to vector<16x96xf32>
    %7 = arith.addf %4, %6 : vector<16x96xf32>
    %8 = vector.shape_cast %7 : vector<16x96xf32> to vector<2x8x96xf32>
    %c0_6 = arith.constant 0 : index
    %c0_7 = arith.constant 0 : index
    %c0_8 = arith.constant 0 : index
    %9 = vector.load %arg5[%c0_6, %c0_7, %c0_8] : memref<2x8x96xf32, #tpu.memory_space<vmem>>, vector<2x8x96xf32>
    tpu.vector_store %arg5[%c0_6, %c0_7, %c0_8], %8 {strides = array<i32>} : memref<2x8x96xf32, #tpu.memory_space<vmem>>, vector<2x8x96xf32>,
    return
  }
  func.func @transform_0(%arg0: i32, %arg1: i32) -> (i32, i32, i32) {
    %c0_i32 = arith.constant 0 : i32
    %c0_i32_0 = arith.constant 0 : i32
    return %arg0, %arg1, %c0_i32 : i32, i32, i32
  }
  func.func @transform_1(%arg0: i32, %arg1: i32) -> (i32, i32) {
    %c0_i32 = arith.constant 0 : i32
    %c0_i32_0 = arith.constant 0 : i32
    %c0_i32_1 = arith.constant 0 : i32
    return %c0_i32, %c0_i32_0 : i32, i32
  }
  func.func @transform_2(%arg0: i32, %arg1: i32) -> (i32, i32) {
    %c0_i32 = arith.constant 0 : i32
    %c0_i32_0 = arith.constant 0 : i32
    %c0_i32_1 = arith.constant 0 : i32
    return %c0_i32, %c0_i32_0 : i32, i32
  }
  func.func @transform_3(%arg0: i32, %arg1: i32) -> (i32, i32, i32) {
    %c0_i32 = arith.constant 0 : i32
    %c0_i32_0 = arith.constant 0 : i32
    return %arg0, %arg1, %c0_i32 : i32, i32, i32
  }
}

module attributes {stable_mosaic.version = 11 : i64} {
  func.func @gru_recurrent_kernel(%arg0: i32, %arg1: i32, %arg2: memref<2x8x96xf32, #tpu.memory_space<vmem>>, %arg3: memref<32x64xbf16, #tpu.memory_space<vmem>>, %arg4: memref<32x32xbf16, #tpu.memory_space<vmem>>, %arg5: memref<2x8x32xf32, #tpu.memory_space<vmem>>, %arg6: memref<2x32xf32, #tpu.memory_space<vmem>>, %arg7: memref<2x32xf32, #tpu.memory_space<vmem>>) attributes {dimension_semantics = [#tpu.dimension_semantics<parallel>, #tpu.dimension_semantics<arbitrary>], iteration_bounds = array<i64: 1, 1>, scalar_prefetch = 0 : i64, scratch_operands = 1 : i64, tpu.core_type = #tpu.core_type<tc>, window_params = [{transform_indices = @transform_0, window_bounds = array<i64: 2, 8, 96>}, {pipeline_mode = #tpu.pipeline_mode<synchronous>, transform_indices = @transform_1, window_bounds = array<i64: 32, 64>}, {pipeline_mode = #tpu.pipeline_mode<synchronous>, transform_indices = @transform_2, window_bounds = array<i64: 32, 32>}, {transform_indices = @transform_3, window_bounds = array<i64: 2, 8, 32>}, {transform_indices = @transform_4, window_bounds = array<i64: 2, 32>}]} {
    %c0_i32 = arith.constant 0 : i32
    %0 = arith.cmpi eq, %arg1, %c0_i32 : i32
    %1 = arith.extui %0 : i1 to i32
    %c0_i32_0 = arith.constant 0 : i32
    %2 = arith.cmpi ne, %1, %c0_i32_0 : i32
    scf.if %2 {
      %cst_61 = arith.constant 0.000000e+00 : f32
      %257 = vector.broadcast %cst_61 : f32 to vector<2x32xf32>
      %c0_62 = arith.constant 0 : index
      %c0_63 = arith.constant 0 : index
      %258 = vector.load %arg7[%c0_62, %c0_63] : memref<2x32xf32, #tpu.memory_space<vmem>>, vector<2x32xf32>
      tpu.vector_store %arg7[%c0_62, %c0_63], %257 {strides = array<i32>} : memref<2x32xf32, #tpu.memory_space<vmem>>, vector<2x32xf32>,
    } else {
    }
    %c0 = arith.constant 0 : index
    %c0_1 = arith.constant 0 : index
    %c0_2 = arith.constant 0 : index
    %3 = vector.load %arg2[%c0, %c0_1, %c0_2] : memref<2x8x96xf32, #tpu.memory_space<vmem>>, vector<2x8x96xf32>
    %c0_3 = arith.constant 0 : index
    %c0_4 = arith.constant 0 : index
    %4 = vector.load %arg3[%c0_3, %c0_4] : memref<32x64xbf16, #tpu.memory_space<vmem>>, vector<32x64xbf16>
    %c0_5 = arith.constant 0 : index
    %c0_6 = arith.constant 0 : index
    %5 = vector.load %arg4[%c0_5, %c0_6] : memref<32x32xbf16, #tpu.memory_space<vmem>>, vector<32x32xbf16>
    %c0_7 = arith.constant 0 : index
    %c0_8 = arith.constant 0 : index
    %6 = vector.load %arg7[%c0_7, %c0_8] : memref<2x32xf32, #tpu.memory_space<vmem>>, vector<2x32xf32>
    %7 = vector.extract_strided_slice %3 {offsets = [0, 0, 0], sizes = [2, 1, 96], strides = [1, 1, 1]} : vector<2x8x96xf32> to vector<2x1x96xf32>
    %8 = vector.shape_cast %7 : vector<2x1x96xf32> to vector<2x96xf32>
    %9 = arith.truncf %6 : vector<2x32xf32> to vector<2x32xbf16>
    %cst = arith.constant dense<0.000000e+00> : vector<2x64xf32>
    %10 = tpu.matmul %9, %4, %cst {dimension_numbers = #tpu.dot_dimension_numbers<[1], [0], [0], [1], [0, 0, 1, 1], [], []>} : vector<2x32xbf16>, vector<32x64xbf16>, vector<2x64xf32> -> vector<2x64xf32>
    %11 = vector.extract_strided_slice %8 {offsets = [0, 0], sizes = [2, 32], strides = [1, 1]} : vector<2x96xf32> to vector<2x32xf32>
    %12 = vector.extract_strided_slice %10 {offsets = [0, 0], sizes = [2, 32], strides = [1, 1]} : vector<2x64xf32> to vector<2x32xf32>
    %13 = arith.addf %11, %12 : vector<2x32xf32>
    %14 = arith.negf %13 : vector<2x32xf32>
    %15 = math.exp %14 : vector<2x32xf32>
    %cst_9 = arith.constant 1.000000e+00 : f32
    %16 = vector.broadcast %cst_9 : f32 to vector<2x32xf32>
    %17 = arith.addf %16, %15 : vector<2x32xf32>
    %18 = arith.divf %16, %17 : vector<2x32xf32>
    %19 = vector.extract_strided_slice %8 {offsets = [0, 32], sizes = [2, 32], strides = [1, 1]} : vector<2x96xf32> to vector<2x32xf32>
    %20 = vector.extract_strided_slice %10 {offsets = [0, 32], sizes = [2, 32], strides = [1, 1]} : vector<2x64xf32> to vector<2x32xf32>
    %21 = arith.addf %19, %20 : vector<2x32xf32>
    %22 = arith.negf %21 : vector<2x32xf32>
    %23 = math.exp %22 : vector<2x32xf32>
    %cst_10 = arith.constant 1.000000e+00 : f32
    %24 = vector.broadcast %cst_10 : f32 to vector<2x32xf32>
    %25 = arith.addf %24, %23 : vector<2x32xf32>
    %26 = arith.divf %24, %25 : vector<2x32xf32>
    %27 = vector.extract_strided_slice %8 {offsets = [0, 64], sizes = [2, 32], strides = [1, 1]} : vector<2x96xf32> to vector<2x32xf32>
    %28 = arith.mulf %26, %6 : vector<2x32xf32>
    %29 = arith.truncf %28 : vector<2x32xf32> to vector<2x32xbf16>
    %cst_11 = arith.constant dense<0.000000e+00> : vector<2x32xf32>
    %30 = tpu.matmul %29, %5, %cst_11 {dimension_numbers = #tpu.dot_dimension_numbers<[1], [0], [0], [1], [0, 0, 1, 1], [], []>} : vector<2x32xbf16>, vector<32x32xbf16>, vector<2x32xf32> -> vector<2x32xf32>
    %31 = arith.addf %27, %30 : vector<2x32xf32>
    %32 = math.tanh %31 : vector<2x32xf32>
    %33 = arith.subf %32, %6 : vector<2x32xf32>
    %34 = arith.mulf %18, %33 : vector<2x32xf32>
    %35 = arith.addf %6, %34 : vector<2x32xf32>
    %36 = vector.shape_cast %35 : vector<2x32xf32> to vector<2x1x32xf32>
    %c0_12 = arith.constant 0 : index
    %c0_13 = arith.constant 0 : index
    %c0_14 = arith.constant 0 : index
    %37 = vector.load %arg5[%c0_12, %c0_13, %c0_14] : memref<2x8x32xf32, #tpu.memory_space<vmem>>, vector<2x1x32xf32>
    tpu.vector_store %arg5[%c0_12, %c0_13, %c0_14], %36 {strides = array<i32>} : memref<2x8x32xf32, #tpu.memory_space<vmem>>, vector<2x1x32xf32>,
    %38 = vector.extract_strided_slice %3 {offsets = [0, 1, 0], sizes = [2, 1, 96], strides = [1, 1, 1]} : vector<2x8x96xf32> to vector<2x1x96xf32>
    %39 = vector.shape_cast %38 : vector<2x1x96xf32> to vector<2x96xf32>
    %40 = arith.truncf %35 : vector<2x32xf32> to vector<2x32xbf16>
    %cst_15 = arith.constant dense<0.000000e+00> : vector<2x64xf32>
    %41 = tpu.matmul %40, %4, %cst_15 {dimension_numbers = #tpu.dot_dimension_numbers<[1], [0], [0], [1], [0, 0, 1, 1], [], []>} : vector<2x32xbf16>, vector<32x64xbf16>, vector<2x64xf32> -> vector<2x64xf32>
    %42 = vector.extract_strided_slice %39 {offsets = [0, 0], sizes = [2, 32], strides = [1, 1]} : vector<2x96xf32> to vector<2x32xf32>
    %43 = vector.extract_strided_slice %41 {offsets = [0, 0], sizes = [2, 32], strides = [1, 1]} : vector<2x64xf32> to vector<2x32xf32>
    %44 = arith.addf %42, %43 : vector<2x32xf32>
    %45 = arith.negf %44 : vector<2x32xf32>
    %46 = math.exp %45 : vector<2x32xf32>
    %cst_16 = arith.constant 1.000000e+00 : f32
    %47 = vector.broadcast %cst_16 : f32 to vector<2x32xf32>
    %48 = arith.addf %47, %46 : vector<2x32xf32>
    %49 = arith.divf %47, %48 : vector<2x32xf32>
    %50 = vector.extract_strided_slice %39 {offsets = [0, 32], sizes = [2, 32], strides = [1, 1]} : vector<2x96xf32> to vector<2x32xf32>
    %51 = vector.extract_strided_slice %41 {offsets = [0, 32], sizes = [2, 32], strides = [1, 1]} : vector<2x64xf32> to vector<2x32xf32>
    %52 = arith.addf %50, %51 : vector<2x32xf32>
    %53 = arith.negf %52 : vector<2x32xf32>
    %54 = math.exp %53 : vector<2x32xf32>
    %cst_17 = arith.constant 1.000000e+00 : f32
    %55 = vector.broadcast %cst_17 : f32 to vector<2x32xf32>
    %56 = arith.addf %55, %54 : vector<2x32xf32>
    %57 = arith.divf %55, %56 : vector<2x32xf32>
    %58 = vector.extract_strided_slice %39 {offsets = [0, 64], sizes = [2, 32], strides = [1, 1]} : vector<2x96xf32> to vector<2x32xf32>
    %59 = arith.mulf %57, %35 : vector<2x32xf32>
    %60 = arith.truncf %59 : vector<2x32xf32> to vector<2x32xbf16>
    %cst_18 = arith.constant dense<0.000000e+00> : vector<2x32xf32>
    %61 = tpu.matmul %60, %5, %cst_18 {dimension_numbers = #tpu.dot_dimension_numbers<[1], [0], [0], [1], [0, 0, 1, 1], [], []>} : vector<2x32xbf16>, vector<32x32xbf16>, vector<2x32xf32> -> vector<2x32xf32>
    %62 = arith.addf %58, %61 : vector<2x32xf32>
    %63 = math.tanh %62 : vector<2x32xf32>
    %64 = arith.subf %63, %35 : vector<2x32xf32>
    %65 = arith.mulf %49, %64 : vector<2x32xf32>
    %66 = arith.addf %35, %65 : vector<2x32xf32>
    %67 = vector.shape_cast %66 : vector<2x32xf32> to vector<2x1x32xf32>
    %c0_19 = arith.constant 0 : index
    %c1 = arith.constant 1 : index
    %c0_20 = arith.constant 0 : index
    %68 = vector.load %arg5[%c0_19, %c1, %c0_20] : memref<2x8x32xf32, #tpu.memory_space<vmem>>, vector<2x1x32xf32>
    tpu.vector_store %arg5[%c0_19, %c1, %c0_20], %67 {strides = array<i32>} : memref<2x8x32xf32, #tpu.memory_space<vmem>>, vector<2x1x32xf32>,
    %69 = vector.extract_strided_slice %3 {offsets = [0, 2, 0], sizes = [2, 1, 96], strides = [1, 1, 1]} : vector<2x8x96xf32> to vector<2x1x96xf32>
    %70 = vector.shape_cast %69 : vector<2x1x96xf32> to vector<2x96xf32>
    %71 = arith.truncf %66 : vector<2x32xf32> to vector<2x32xbf16>
    %cst_21 = arith.constant dense<0.000000e+00> : vector<2x64xf32>
    %72 = tpu.matmul %71, %4, %cst_21 {dimension_numbers = #tpu.dot_dimension_numbers<[1], [0], [0], [1], [0, 0, 1, 1], [], []>} : vector<2x32xbf16>, vector<32x64xbf16>, vector<2x64xf32> -> vector<2x64xf32>
    %73 = vector.extract_strided_slice %70 {offsets = [0, 0], sizes = [2, 32], strides = [1, 1]} : vector<2x96xf32> to vector<2x32xf32>
    %74 = vector.extract_strided_slice %72 {offsets = [0, 0], sizes = [2, 32], strides = [1, 1]} : vector<2x64xf32> to vector<2x32xf32>
    %75 = arith.addf %73, %74 : vector<2x32xf32>
    %76 = arith.negf %75 : vector<2x32xf32>
    %77 = math.exp %76 : vector<2x32xf32>
    %cst_22 = arith.constant 1.000000e+00 : f32
    %78 = vector.broadcast %cst_22 : f32 to vector<2x32xf32>
    %79 = arith.addf %78, %77 : vector<2x32xf32>
    %80 = arith.divf %78, %79 : vector<2x32xf32>
    %81 = vector.extract_strided_slice %70 {offsets = [0, 32], sizes = [2, 32], strides = [1, 1]} : vector<2x96xf32> to vector<2x32xf32>
    %82 = vector.extract_strided_slice %72 {offsets = [0, 32], sizes = [2, 32], strides = [1, 1]} : vector<2x64xf32> to vector<2x32xf32>
    %83 = arith.addf %81, %82 : vector<2x32xf32>
    %84 = arith.negf %83 : vector<2x32xf32>
    %85 = math.exp %84 : vector<2x32xf32>
    %cst_23 = arith.constant 1.000000e+00 : f32
    %86 = vector.broadcast %cst_23 : f32 to vector<2x32xf32>
    %87 = arith.addf %86, %85 : vector<2x32xf32>
    %88 = arith.divf %86, %87 : vector<2x32xf32>
    %89 = vector.extract_strided_slice %70 {offsets = [0, 64], sizes = [2, 32], strides = [1, 1]} : vector<2x96xf32> to vector<2x32xf32>
    %90 = arith.mulf %88, %66 : vector<2x32xf32>
    %91 = arith.truncf %90 : vector<2x32xf32> to vector<2x32xbf16>
    %cst_24 = arith.constant dense<0.000000e+00> : vector<2x32xf32>
    %92 = tpu.matmul %91, %5, %cst_24 {dimension_numbers = #tpu.dot_dimension_numbers<[1], [0], [0], [1], [0, 0, 1, 1], [], []>} : vector<2x32xbf16>, vector<32x32xbf16>, vector<2x32xf32> -> vector<2x32xf32>
    %93 = arith.addf %89, %92 : vector<2x32xf32>
    %94 = math.tanh %93 : vector<2x32xf32>
    %95 = arith.subf %94, %66 : vector<2x32xf32>
    %96 = arith.mulf %80, %95 : vector<2x32xf32>
    %97 = arith.addf %66, %96 : vector<2x32xf32>
    %98 = vector.shape_cast %97 : vector<2x32xf32> to vector<2x1x32xf32>
    %c0_25 = arith.constant 0 : index
    %c2 = arith.constant 2 : index
    %c0_26 = arith.constant 0 : index
    %99 = vector.load %arg5[%c0_25, %c2, %c0_26] : memref<2x8x32xf32, #tpu.memory_space<vmem>>, vector<2x1x32xf32>
    tpu.vector_store %arg5[%c0_25, %c2, %c0_26], %98 {strides = array<i32>} : memref<2x8x32xf32, #tpu.memory_space<vmem>>, vector<2x1x32xf32>,
    %100 = vector.extract_strided_slice %3 {offsets = [0, 3, 0], sizes = [2, 1, 96], strides = [1, 1, 1]} : vector<2x8x96xf32> to vector<2x1x96xf32>
    %101 = vector.shape_cast %100 : vector<2x1x96xf32> to vector<2x96xf32>
    %102 = arith.truncf %97 : vector<2x32xf32> to vector<2x32xbf16>
    %cst_27 = arith.constant dense<0.000000e+00> : vector<2x64xf32>
    %103 = tpu.matmul %102, %4, %cst_27 {dimension_numbers = #tpu.dot_dimension_numbers<[1], [0], [0], [1], [0, 0, 1, 1], [], []>} : vector<2x32xbf16>, vector<32x64xbf16>, vector<2x64xf32> -> vector<2x64xf32>
    %104 = vector.extract_strided_slice %101 {offsets = [0, 0], sizes = [2, 32], strides = [1, 1]} : vector<2x96xf32> to vector<2x32xf32>
    %105 = vector.extract_strided_slice %103 {offsets = [0, 0], sizes = [2, 32], strides = [1, 1]} : vector<2x64xf32> to vector<2x32xf32>
    %106 = arith.addf %104, %105 : vector<2x32xf32>
    %107 = arith.negf %106 : vector<2x32xf32>
    %108 = math.exp %107 : vector<2x32xf32>
    %cst_28 = arith.constant 1.000000e+00 : f32
    %109 = vector.broadcast %cst_28 : f32 to vector<2x32xf32>
    %110 = arith.addf %109, %108 : vector<2x32xf32>
    %111 = arith.divf %109, %110 : vector<2x32xf32>
    %112 = vector.extract_strided_slice %101 {offsets = [0, 32], sizes = [2, 32], strides = [1, 1]} : vector<2x96xf32> to vector<2x32xf32>
    %113 = vector.extract_strided_slice %103 {offsets = [0, 32], sizes = [2, 32], strides = [1, 1]} : vector<2x64xf32> to vector<2x32xf32>
    %114 = arith.addf %112, %113 : vector<2x32xf32>
    %115 = arith.negf %114 : vector<2x32xf32>
    %116 = math.exp %115 : vector<2x32xf32>
    %cst_29 = arith.constant 1.000000e+00 : f32
    %117 = vector.broadcast %cst_29 : f32 to vector<2x32xf32>
    %118 = arith.addf %117, %116 : vector<2x32xf32>
    %119 = arith.divf %117, %118 : vector<2x32xf32>
    %120 = vector.extract_strided_slice %101 {offsets = [0, 64], sizes = [2, 32], strides = [1, 1]} : vector<2x96xf32> to vector<2x32xf32>
    %121 = arith.mulf %119, %97 : vector<2x32xf32>
    %122 = arith.truncf %121 : vector<2x32xf32> to vector<2x32xbf16>
    %cst_30 = arith.constant dense<0.000000e+00> : vector<2x32xf32>
    %123 = tpu.matmul %122, %5, %cst_30 {dimension_numbers = #tpu.dot_dimension_numbers<[1], [0], [0], [1], [0, 0, 1, 1], [], []>} : vector<2x32xbf16>, vector<32x32xbf16>, vector<2x32xf32> -> vector<2x32xf32>
    %124 = arith.addf %120, %123 : vector<2x32xf32>
    %125 = math.tanh %124 : vector<2x32xf32>
    %126 = arith.subf %125, %97 : vector<2x32xf32>
    %127 = arith.mulf %111, %126 : vector<2x32xf32>
    %128 = arith.addf %97, %127 : vector<2x32xf32>
    %129 = vector.shape_cast %128 : vector<2x32xf32> to vector<2x1x32xf32>
    %c0_31 = arith.constant 0 : index
    %c3 = arith.constant 3 : index
    %c0_32 = arith.constant 0 : index
    %130 = vector.load %arg5[%c0_31, %c3, %c0_32] : memref<2x8x32xf32, #tpu.memory_space<vmem>>, vector<2x1x32xf32>
    tpu.vector_store %arg5[%c0_31, %c3, %c0_32], %129 {strides = array<i32>} : memref<2x8x32xf32, #tpu.memory_space<vmem>>, vector<2x1x32xf32>,
    %131 = vector.extract_strided_slice %3 {offsets = [0, 4, 0], sizes = [2, 1, 96], strides = [1, 1, 1]} : vector<2x8x96xf32> to vector<2x1x96xf32>
    %132 = vector.shape_cast %131 : vector<2x1x96xf32> to vector<2x96xf32>
    %133 = arith.truncf %128 : vector<2x32xf32> to vector<2x32xbf16>
    %cst_33 = arith.constant dense<0.000000e+00> : vector<2x64xf32>
    %134 = tpu.matmul %133, %4, %cst_33 {dimension_numbers = #tpu.dot_dimension_numbers<[1], [0], [0], [1], [0, 0, 1, 1], [], []>} : vector<2x32xbf16>, vector<32x64xbf16>, vector<2x64xf32> -> vector<2x64xf32>
    %135 = vector.extract_strided_slice %132 {offsets = [0, 0], sizes = [2, 32], strides = [1, 1]} : vector<2x96xf32> to vector<2x32xf32>
    %136 = vector.extract_strided_slice %134 {offsets = [0, 0], sizes = [2, 32], strides = [1, 1]} : vector<2x64xf32> to vector<2x32xf32>
    %137 = arith.addf %135, %136 : vector<2x32xf32>
    %138 = arith.negf %137 : vector<2x32xf32>
    %139 = math.exp %138 : vector<2x32xf32>
    %cst_34 = arith.constant 1.000000e+00 : f32
    %140 = vector.broadcast %cst_34 : f32 to vector<2x32xf32>
    %141 = arith.addf %140, %139 : vector<2x32xf32>
    %142 = arith.divf %140, %141 : vector<2x32xf32>
    %143 = vector.extract_strided_slice %132 {offsets = [0, 32], sizes = [2, 32], strides = [1, 1]} : vector<2x96xf32> to vector<2x32xf32>
    %144 = vector.extract_strided_slice %134 {offsets = [0, 32], sizes = [2, 32], strides = [1, 1]} : vector<2x64xf32> to vector<2x32xf32>
    %145 = arith.addf %143, %144 : vector<2x32xf32>
    %146 = arith.negf %145 : vector<2x32xf32>
    %147 = math.exp %146 : vector<2x32xf32>
    %cst_35 = arith.constant 1.000000e+00 : f32
    %148 = vector.broadcast %cst_35 : f32 to vector<2x32xf32>
    %149 = arith.addf %148, %147 : vector<2x32xf32>
    %150 = arith.divf %148, %149 : vector<2x32xf32>
    %151 = vector.extract_strided_slice %132 {offsets = [0, 64], sizes = [2, 32], strides = [1, 1]} : vector<2x96xf32> to vector<2x32xf32>
    %152 = arith.mulf %150, %128 : vector<2x32xf32>
    %153 = arith.truncf %152 : vector<2x32xf32> to vector<2x32xbf16>
    %cst_36 = arith.constant dense<0.000000e+00> : vector<2x32xf32>
    %154 = tpu.matmul %153, %5, %cst_36 {dimension_numbers = #tpu.dot_dimension_numbers<[1], [0], [0], [1], [0, 0, 1, 1], [], []>} : vector<2x32xbf16>, vector<32x32xbf16>, vector<2x32xf32> -> vector<2x32xf32>
    %155 = arith.addf %151, %154 : vector<2x32xf32>
    %156 = math.tanh %155 : vector<2x32xf32>
    %157 = arith.subf %156, %128 : vector<2x32xf32>
    %158 = arith.mulf %142, %157 : vector<2x32xf32>
    %159 = arith.addf %128, %158 : vector<2x32xf32>
    %160 = vector.shape_cast %159 : vector<2x32xf32> to vector<2x1x32xf32>
    %c0_37 = arith.constant 0 : index
    %c4 = arith.constant 4 : index
    %c0_38 = arith.constant 0 : index
    %161 = vector.load %arg5[%c0_37, %c4, %c0_38] : memref<2x8x32xf32, #tpu.memory_space<vmem>>, vector<2x1x32xf32>
    tpu.vector_store %arg5[%c0_37, %c4, %c0_38], %160 {strides = array<i32>} : memref<2x8x32xf32, #tpu.memory_space<vmem>>, vector<2x1x32xf32>,
    %162 = vector.extract_strided_slice %3 {offsets = [0, 5, 0], sizes = [2, 1, 96], strides = [1, 1, 1]} : vector<2x8x96xf32> to vector<2x1x96xf32>
    %163 = vector.shape_cast %162 : vector<2x1x96xf32> to vector<2x96xf32>
    %164 = arith.truncf %159 : vector<2x32xf32> to vector<2x32xbf16>
    %cst_39 = arith.constant dense<0.000000e+00> : vector<2x64xf32>
    %165 = tpu.matmul %164, %4, %cst_39 {dimension_numbers = #tpu.dot_dimension_numbers<[1], [0], [0], [1], [0, 0, 1, 1], [], []>} : vector<2x32xbf16>, vector<32x64xbf16>, vector<2x64xf32> -> vector<2x64xf32>
    %166 = vector.extract_strided_slice %163 {offsets = [0, 0], sizes = [2, 32], strides = [1, 1]} : vector<2x96xf32> to vector<2x32xf32>
    %167 = vector.extract_strided_slice %165 {offsets = [0, 0], sizes = [2, 32], strides = [1, 1]} : vector<2x64xf32> to vector<2x32xf32>
    %168 = arith.addf %166, %167 : vector<2x32xf32>
    %169 = arith.negf %168 : vector<2x32xf32>
    %170 = math.exp %169 : vector<2x32xf32>
    %cst_40 = arith.constant 1.000000e+00 : f32
    %171 = vector.broadcast %cst_40 : f32 to vector<2x32xf32>
    %172 = arith.addf %171, %170 : vector<2x32xf32>
    %173 = arith.divf %171, %172 : vector<2x32xf32>
    %174 = vector.extract_strided_slice %163 {offsets = [0, 32], sizes = [2, 32], strides = [1, 1]} : vector<2x96xf32> to vector<2x32xf32>
    %175 = vector.extract_strided_slice %165 {offsets = [0, 32], sizes = [2, 32], strides = [1, 1]} : vector<2x64xf32> to vector<2x32xf32>
    %176 = arith.addf %174, %175 : vector<2x32xf32>
    %177 = arith.negf %176 : vector<2x32xf32>
    %178 = math.exp %177 : vector<2x32xf32>
    %cst_41 = arith.constant 1.000000e+00 : f32
    %179 = vector.broadcast %cst_41 : f32 to vector<2x32xf32>
    %180 = arith.addf %179, %178 : vector<2x32xf32>
    %181 = arith.divf %179, %180 : vector<2x32xf32>
    %182 = vector.extract_strided_slice %163 {offsets = [0, 64], sizes = [2, 32], strides = [1, 1]} : vector<2x96xf32> to vector<2x32xf32>
    %183 = arith.mulf %181, %159 : vector<2x32xf32>
    %184 = arith.truncf %183 : vector<2x32xf32> to vector<2x32xbf16>
    %cst_42 = arith.constant dense<0.000000e+00> : vector<2x32xf32>
    %185 = tpu.matmul %184, %5, %cst_42 {dimension_numbers = #tpu.dot_dimension_numbers<[1], [0], [0], [1], [0, 0, 1, 1], [], []>} : vector<2x32xbf16>, vector<32x32xbf16>, vector<2x32xf32> -> vector<2x32xf32>
    %186 = arith.addf %182, %185 : vector<2x32xf32>
    %187 = math.tanh %186 : vector<2x32xf32>
    %188 = arith.subf %187, %159 : vector<2x32xf32>
    %189 = arith.mulf %173, %188 : vector<2x32xf32>
    %190 = arith.addf %159, %189 : vector<2x32xf32>
    %191 = vector.shape_cast %190 : vector<2x32xf32> to vector<2x1x32xf32>
    %c0_43 = arith.constant 0 : index
    %c5 = arith.constant 5 : index
    %c0_44 = arith.constant 0 : index
    %192 = vector.load %arg5[%c0_43, %c5, %c0_44] : memref<2x8x32xf32, #tpu.memory_space<vmem>>, vector<2x1x32xf32>
    tpu.vector_store %arg5[%c0_43, %c5, %c0_44], %191 {strides = array<i32>} : memref<2x8x32xf32, #tpu.memory_space<vmem>>, vector<2x1x32xf32>,
    %193 = vector.extract_strided_slice %3 {offsets = [0, 6, 0], sizes = [2, 1, 96], strides = [1, 1, 1]} : vector<2x8x96xf32> to vector<2x1x96xf32>
    %194 = vector.shape_cast %193 : vector<2x1x96xf32> to vector<2x96xf32>
    %195 = arith.truncf %190 : vector<2x32xf32> to vector<2x32xbf16>
    %cst_45 = arith.constant dense<0.000000e+00> : vector<2x64xf32>
    %196 = tpu.matmul %195, %4, %cst_45 {dimension_numbers = #tpu.dot_dimension_numbers<[1], [0], [0], [1], [0, 0, 1, 1], [], []>} : vector<2x32xbf16>, vector<32x64xbf16>, vector<2x64xf32> -> vector<2x64xf32>
    %197 = vector.extract_strided_slice %194 {offsets = [0, 0], sizes = [2, 32], strides = [1, 1]} : vector<2x96xf32> to vector<2x32xf32>
    %198 = vector.extract_strided_slice %196 {offsets = [0, 0], sizes = [2, 32], strides = [1, 1]} : vector<2x64xf32> to vector<2x32xf32>
    %199 = arith.addf %197, %198 : vector<2x32xf32>
    %200 = arith.negf %199 : vector<2x32xf32>
    %201 = math.exp %200 : vector<2x32xf32>
    %cst_46 = arith.constant 1.000000e+00 : f32
    %202 = vector.broadcast %cst_46 : f32 to vector<2x32xf32>
    %203 = arith.addf %202, %201 : vector<2x32xf32>
    %204 = arith.divf %202, %203 : vector<2x32xf32>
    %205 = vector.extract_strided_slice %194 {offsets = [0, 32], sizes = [2, 32], strides = [1, 1]} : vector<2x96xf32> to vector<2x32xf32>
    %206 = vector.extract_strided_slice %196 {offsets = [0, 32], sizes = [2, 32], strides = [1, 1]} : vector<2x64xf32> to vector<2x32xf32>
    %207 = arith.addf %205, %206 : vector<2x32xf32>
    %208 = arith.negf %207 : vector<2x32xf32>
    %209 = math.exp %208 : vector<2x32xf32>
    %cst_47 = arith.constant 1.000000e+00 : f32
    %210 = vector.broadcast %cst_47 : f32 to vector<2x32xf32>
    %211 = arith.addf %210, %209 : vector<2x32xf32>
    %212 = arith.divf %210, %211 : vector<2x32xf32>
    %213 = vector.extract_strided_slice %194 {offsets = [0, 64], sizes = [2, 32], strides = [1, 1]} : vector<2x96xf32> to vector<2x32xf32>
    %214 = arith.mulf %212, %190 : vector<2x32xf32>
    %215 = arith.truncf %214 : vector<2x32xf32> to vector<2x32xbf16>
    %cst_48 = arith.constant dense<0.000000e+00> : vector<2x32xf32>
    %216 = tpu.matmul %215, %5, %cst_48 {dimension_numbers = #tpu.dot_dimension_numbers<[1], [0], [0], [1], [0, 0, 1, 1], [], []>} : vector<2x32xbf16>, vector<32x32xbf16>, vector<2x32xf32> -> vector<2x32xf32>
    %217 = arith.addf %213, %216 : vector<2x32xf32>
    %218 = math.tanh %217 : vector<2x32xf32>
    %219 = arith.subf %218, %190 : vector<2x32xf32>
    %220 = arith.mulf %204, %219 : vector<2x32xf32>
    %221 = arith.addf %190, %220 : vector<2x32xf32>
    %222 = vector.shape_cast %221 : vector<2x32xf32> to vector<2x1x32xf32>
    %c0_49 = arith.constant 0 : index
    %c6 = arith.constant 6 : index
    %c0_50 = arith.constant 0 : index
    %223 = vector.load %arg5[%c0_49, %c6, %c0_50] : memref<2x8x32xf32, #tpu.memory_space<vmem>>, vector<2x1x32xf32>
    tpu.vector_store %arg5[%c0_49, %c6, %c0_50], %222 {strides = array<i32>} : memref<2x8x32xf32, #tpu.memory_space<vmem>>, vector<2x1x32xf32>,
    %224 = vector.extract_strided_slice %3 {offsets = [0, 7, 0], sizes = [2, 1, 96], strides = [1, 1, 1]} : vector<2x8x96xf32> to vector<2x1x96xf32>
    %225 = vector.shape_cast %224 : vector<2x1x96xf32> to vector<2x96xf32>
    %226 = arith.truncf %221 : vector<2x32xf32> to vector<2x32xbf16>
    %cst_51 = arith.constant dense<0.000000e+00> : vector<2x64xf32>
    %227 = tpu.matmul %226, %4, %cst_51 {dimension_numbers = #tpu.dot_dimension_numbers<[1], [0], [0], [1], [0, 0, 1, 1], [], []>} : vector<2x32xbf16>, vector<32x64xbf16>, vector<2x64xf32> -> vector<2x64xf32>
    %228 = vector.extract_strided_slice %225 {offsets = [0, 0], sizes = [2, 32], strides = [1, 1]} : vector<2x96xf32> to vector<2x32xf32>
    %229 = vector.extract_strided_slice %227 {offsets = [0, 0], sizes = [2, 32], strides = [1, 1]} : vector<2x64xf32> to vector<2x32xf32>
    %230 = arith.addf %228, %229 : vector<2x32xf32>
    %231 = arith.negf %230 : vector<2x32xf32>
    %232 = math.exp %231 : vector<2x32xf32>
    %cst_52 = arith.constant 1.000000e+00 : f32
    %233 = vector.broadcast %cst_52 : f32 to vector<2x32xf32>
    %234 = arith.addf %233, %232 : vector<2x32xf32>
    %235 = arith.divf %233, %234 : vector<2x32xf32>
    %236 = vector.extract_strided_slice %225 {offsets = [0, 32], sizes = [2, 32], strides = [1, 1]} : vector<2x96xf32> to vector<2x32xf32>
    %237 = vector.extract_strided_slice %227 {offsets = [0, 32], sizes = [2, 32], strides = [1, 1]} : vector<2x64xf32> to vector<2x32xf32>
    %238 = arith.addf %236, %237 : vector<2x32xf32>
    %239 = arith.negf %238 : vector<2x32xf32>
    %240 = math.exp %239 : vector<2x32xf32>
    %cst_53 = arith.constant 1.000000e+00 : f32
    %241 = vector.broadcast %cst_53 : f32 to vector<2x32xf32>
    %242 = arith.addf %241, %240 : vector<2x32xf32>
    %243 = arith.divf %241, %242 : vector<2x32xf32>
    %244 = vector.extract_strided_slice %225 {offsets = [0, 64], sizes = [2, 32], strides = [1, 1]} : vector<2x96xf32> to vector<2x32xf32>
    %245 = arith.mulf %243, %221 : vector<2x32xf32>
    %246 = arith.truncf %245 : vector<2x32xf32> to vector<2x32xbf16>
    %cst_54 = arith.constant dense<0.000000e+00> : vector<2x32xf32>
    %247 = tpu.matmul %246, %5, %cst_54 {dimension_numbers = #tpu.dot_dimension_numbers<[1], [0], [0], [1], [0, 0, 1, 1], [], []>} : vector<2x32xbf16>, vector<32x32xbf16>, vector<2x32xf32> -> vector<2x32xf32>
    %248 = arith.addf %244, %247 : vector<2x32xf32>
    %249 = math.tanh %248 : vector<2x32xf32>
    %250 = arith.subf %249, %221 : vector<2x32xf32>
    %251 = arith.mulf %235, %250 : vector<2x32xf32>
    %252 = arith.addf %221, %251 : vector<2x32xf32>
    %253 = vector.shape_cast %252 : vector<2x32xf32> to vector<2x1x32xf32>
    %c0_55 = arith.constant 0 : index
    %c7 = arith.constant 7 : index
    %c0_56 = arith.constant 0 : index
    %254 = vector.load %arg5[%c0_55, %c7, %c0_56] : memref<2x8x32xf32, #tpu.memory_space<vmem>>, vector<2x1x32xf32>
    tpu.vector_store %arg5[%c0_55, %c7, %c0_56], %253 {strides = array<i32>} : memref<2x8x32xf32, #tpu.memory_space<vmem>>, vector<2x1x32xf32>,
    %c0_57 = arith.constant 0 : index
    %c0_58 = arith.constant 0 : index
    %255 = vector.load %arg7[%c0_57, %c0_58] : memref<2x32xf32, #tpu.memory_space<vmem>>, vector<2x32xf32>
    tpu.vector_store %arg7[%c0_57, %c0_58], %252 {strides = array<i32>} : memref<2x32xf32, #tpu.memory_space<vmem>>, vector<2x32xf32>,
    %c0_59 = arith.constant 0 : index
    %c0_60 = arith.constant 0 : index
    %256 = vector.load %arg6[%c0_59, %c0_60] : memref<2x32xf32, #tpu.memory_space<vmem>>, vector<2x32xf32>
    tpu.vector_store %arg6[%c0_59, %c0_60], %252 {strides = array<i32>} : memref<2x32xf32, #tpu.memory_space<vmem>>, vector<2x32xf32>,
    return
  }
  func.func @transform_0(%arg0: i32, %arg1: i32) -> (i32, i32, i32) {
    %c0_i32 = arith.constant 0 : i32
    %c0_i32_0 = arith.constant 0 : i32
    return %arg0, %arg1, %c0_i32 : i32, i32, i32
  }
  func.func @transform_1(%arg0: i32, %arg1: i32) -> (i32, i32) {
    %c0_i32 = arith.constant 0 : i32
    %c0_i32_0 = arith.constant 0 : i32
    %c0_i32_1 = arith.constant 0 : i32
    return %c0_i32, %c0_i32_0 : i32, i32
  }
  func.func @transform_2(%arg0: i32, %arg1: i32) -> (i32, i32) {
    %c0_i32 = arith.constant 0 : i32
    %c0_i32_0 = arith.constant 0 : i32
    %c0_i32_1 = arith.constant 0 : i32
    return %c0_i32, %c0_i32_0 : i32, i32
  }
  func.func @transform_3(%arg0: i32, %arg1: i32) -> (i32, i32, i32) {
    %c0_i32 = arith.constant 0 : i32
    %c0_i32_0 = arith.constant 0 : i32
    return %arg0, %arg1, %c0_i32 : i32, i32, i32
  }
  func.func @transform_4(%arg0: i32, %arg1: i32) -> (i32, i32) {
    %c0_i32 = arith.constant 0 : i32
    %c0_i32_0 = arith.constant 0 : i32
    return %arg0, %c0_i32 : i32, i32
  }
}

</mosaic_0001>

<bundles_post_ra>
// kernel: gru_forward.2
= control target key start
LH: loop header
LB: loop body
LE: loop exit
PB: predicated region body
PF: predicated region fallthrough
CT: control target
= control target key end

     0   :  { %v99_v0 = vmov 0.0   ;;  %vm100_vm0 = vmmov 0   ;;  %vm33_vm1 = vcmask 130048   ;;  %vm78_vm2 = vcmask 785408   ;;  %s139_s1 = inlined_call_operand.vmem [shape: bf16[16,96], index: 1, kind: input, shape index: {}]   ;;  %s140_s0 = inlined_call_operand.vmem [shape: f32[2,8,16], index: 0, kind: input, shape index: {}]   ;;  %s141_s2 = inlined_call_operand.vmem [shape: f32[1,96], index: 2, kind: input, shape index: {}]   ;;  %s142_s3 = inlined_call_operand.vmem [shape: f32[2,8,96], index: 3, kind: output, shape index: {}]  }
   0x1   :  { %90 = vmatprep.subr.bf16.mxu0 %v99_v0  ;;  %v98_v1 = vld [vmem:[%s139_s1] sm:$0xff]   ;;  %92 = vmatprep.mubr.msk.bf16.mxu0 %vm100_vm0, %v99_v0  ;;  %v16_v3 = vld [vmem:[%s140_s0 + $0x8] sm:$0xff] }
   0x2   :  { %v15_v2 = vld [vmem:[%s140_s0] sm:$0xff]  ;;  %91 = vmatpush3.bf16.msra.mxu0 %v98_v1 }
   0x3   :  { %v17_v4 = vpack.c.bf16 %v16_v3, %v15_v2  ;;  %v85_v5 = vld [vmem:[%s141_s2] ss:$0 sm:$0xff] }
   0x5   :  { %93 = vmatmul.mubr.msk.bf16.vlgmr.msra.gmra.mrb[0].mxu0 %vm33_vm1, %v17_v4 }
  0xd8   :  { %v71_v6 = vpop.f32.mrb[0].mxu0 }
  0xd9   :  { %v72_v7 = vadd.f32 %v85_v5, %v71_v6  ;;  %v94_v8 = vpop.f32.mrb[1].mxu0 }
  0xda   :  { %v74_v9 = vpop.f32.mrb[2].mxu0 }
  0xdb   :  { %79 = vst.msk [vmem:[%s142_s3] sm:$0xff] %vm78_vm2, %v72_v7  ;;  %v75_v10 = vadd.f32 %v85_v5, %v74_v9  ;;  %v95_v11 = vpop.f32.mrb[3].mxu0 }
  0xdd   :  { %80 = vst.msk [vmem:[%s142_s3 + $0x8] sm:$0xff] %vm78_vm2, %v75_v10 }

// kernel: gru_forward.3
= control target key start
LH: loop header
LB: loop body
LE: loop exit
PB: predicated region body
PF: predicated region fallthrough
CT: control target
= control target key end

     0   :  { %10 = vsyncpa [#allocation4], 0  ;;  %v2007_v1 = vmov 0.0   ;;  %vm2008_vm0 = vmmov 0   ;;  %vm23_vm1 = vcmask 254976   ;;  %s2501_s0 = inlined_call_operand.vmem [shape: f32[2,8,96], index: 0, kind: input, shape index: {}]   ;;  %s2502_s1 = inlined_call_operand.vmem [shape: bf16[32,64], index: 1, kind: input, shape index: {}]   ;;  %s2503_s2 = inlined_call_operand.vmem [shape: bf16[32,32], index: 2, kind: input, shape index: {}]   ;;  %s2504_s3 = inlined_call_operand.hbm [shape: f32[2,8,32], index: 3, kind: output, shape index: {0}]   ;;  %s2505_s4 = inlined_call_operand.hbm [shape: f32[2,32], index: 4, kind: output, shape index: {1}]  }
   0x1   :  { %v2045_v0 = vld [vmem:[%s2502_s1] sm:$0xff]   ;;  %1715 = vmatprep.subr.bf16.mxu0 %v2007_v1  ;;  %1723 = vmatprep.subr.bf16.mxu1 %v2007_v1  ;;  %v2053_v2 = vld [vmem:[%s2502_s1 + $0x8] sm:$0xff]   ;;  %24 = vst.msk [vmem:[#allocation2] sm:$0x3] %vm23_vm1, %v2007_v1 }
   0x2   :  { %1716 = vmatpush3.bf16.msra.mxu0 %v2045_v0  ;;  %1719 = vmatprep.mubr.msk.bf16.mxu0 %vm2008_vm0, %v2007_v1 }
   0x3   :  { %1717 = vmatprep.subr.bf16.mxu0 %v2007_v1  ;;  %1727 = vmatprep.mubr.msk.bf16.mxu1 %vm2008_vm0, %v2007_v1 }
   0x4   :  { %11 = vsyncpa [#allocation6], 0  ;;  %vm49_vm2 = vcmask 261120   ;;  %s2009_s19 = smov 32   ;;  %v2084_v6 = vld [vmem:[%s2503_s2] sm:$0xff]   ;;  %v2090_v7 = vld [vmem:[%s2503_s2 + $0x8] sm:$0xff]   ;;  %v228_v54 = vlaneseq }
   0x5   :  { %1724 = vmatpush3.bf16.msra.mxu1 %v2084_v6  ;;  %v2098_v8 = vld [vmem:[%s2501_s0] sm:$0xff]  ;;  %v2103_v9 = vld [vmem:[%s2501_s0 + $0x8] sm:$0xff]  ;;  %vm128_vm3 = vcmask 1041409   ;;  %s2010_s28 = smov 96   ;;  %s2011_s29 = smov 64   ;;  %vm249_vm4 = vcmask 253952  }
   0x6   :  { %1718 = vmatpush3.bf16.msra.mxu0 %v2053_v2  ;;  %1725 = vmatprep.subr.bf16.mxu1 %v2007_v1  ;;  %v2012_v52 = vmov 1966171168   ;;  %v229_v57 = vshrl.u32 %v228_v54, 7  ;;  %s2014_s15 = smov [#allocation3]  }
   0x7   :  { %1731 = vmatprep.subr.bf16.mxu0 %v2007_v1  ;;  %v226_v53 = vunpack.c.l.s4 %v2012_v52  ;;  %s1606_s16 = sshll.u32 %s2014_s15, 4  ;;  %s1607_s16 = int_to_ptr.vmem [resolvable:$true] %s1606_s16 }
   0x8   :  { %v2064_v3 = vld [vmem:[#allocation2] sm:$0x3] }
   0x9   :  { %v36_v4 = vpack.c.bf16 %v2064_v3, %v2064_v3  ;;  %v112_v5 = vrot.slane %v2064_v3, 1  ;;  %1726 = vmatpush3.bf16.msra.mxu1 %v2090_v7  ;;  %v227_v56 = vunpack.c.0.s8 %v226_v53 }
   0xa   :  { %1739 = vmatprep.subr.bf16.mxu1 %v2007_v1 }
   0xb   :  { %1720 = vmatmul.mubr.msk.bf16.vlgmr.msra.gmra.mrb[0].mxu0 %vm49_vm2, %v36_v4  ;;  %115 = vrot.lane.b32.xlu0 %v112_v5, %s2009_s19  ;;  %v2127_v62 = vsub.s32 %v227_v56, %v229_v57 }
   0xc   :  { %1732 = vmatpush3.bf16.msra.mxu0 %v2045_v0  ;;  %1735 = vmatprep.mubr.msk.bf16.mxu0 %vm2008_vm0, %v2007_v1 }
   0xd   :  { %1733 = vmatprep.subr.bf16.mxu0 %v2007_v1 }
   0xf   :  { %113 = vrot.lane.b32.xlu0 %v2064_v3, %s2009_s19 }
  0x10   :  { %1734 = vmatpush3.bf16.msra.mxu0 %v2053_v2 }
  0x11   :  { %1747 = vmatprep.subr.bf16.mxu0 %v2007_v1 }
  0x7d   :  { %v116_v23 = vpop.permute.xlu0 %115 }
  0x81   :  { %v114_v24 = vpop.permute.xlu0 %113 }
  0xde   :  { %v87_v10 = vpop.f32.mrb[0].mxu0 }
  0xdf   :  { %v94_v11 = vrot.slane %v87_v10, 1  ;;  %v97_v12 = vadd.f32 %v87_v10, %v2098_v8  ;;  %v1721_v13 = vpop.f32.mrb[1].mxu0 }
  0xe0   :  { %v90_v14 = vpop.f32.mrb[2].mxu0 }
  0xe1   :  { %v98_v15 = vadd.f32 %v94_v11, %v2103_v9  ;;  %v1634_v16 = vmul.f32 -1.442695, %v97_v12  ;;  %v1722_v17 = vpop.f32.mrb[3].mxu0 }
  0xe3   :  { %1857 = vpow2.f32 %v1634_v16  ;;  %v1635_v18 = vmul.f32 -1.442695, %v98_v15 }
  0xe5   :  { %1859 = vpow2.f32 %v1635_v18 }
  0xed   :  { %v1858_v19 = vpop.eup %1857 }
  0xee   :  { %v105_v20 = vadd.f32 1.0, %v1858_v19 }
  0xef   :  { %v1860_v21 = vpop.eup %1859 }
  0xf0   :  { %v106_v22 = vadd.f32 1.0, %v1860_v21  ;;  %1861 = vrcp.f32 %v105_v20 }
  0xf2   :  { %1863 = vrcp.f32 %v106_v22 }
  0xfa   :  { %v1862_v25 = vpop.eup %1861 }
  0xfb   :  { %v119_v26 = vmul.f32 %v1862_v25, %v114_v24 }
  0xfc   :  { %v1864_v27 = vpop.eup %1863 }
  0xfd   :  { %v120_v28 = vmul.f32 %v1864_v27, %v116_v23  ;;  %v121_v30 = vpack.c.bf16 %v119_v26, %v119_v26 }
  0xff   :  { %v122_v29 = vpack.c.bf16 %v120_v28, %v120_v28  ;;  %v125_v33 = vunpack.c.l.b16 %v121_v30 }
 0x101   :  { %v126_v31 = vunpack.c.l.b16 %v122_v29 }
 0x103   :  { %v127_v32 = vrot.slane %v126_v31, 7 }
 0x105   :  { %v129_v34 = vsel %vm128_vm3, %v127_v32, %v125_v33 }
 0x106   :  { %v130_v35 = vpack.c.b16 %v129_v34, %v129_v34 }
 0x108   :  { %131 = vrot.lane.b32.xlu1 %v130_v35, %s2010_s28 }
 0x17a   :  { %v132_v36 = vpop.permute.xlu1 %131 }
 0x17b   :  { %1728 = vmatmul.mubr.msk.bf16.vlgmr.msra.gmra.mrb[0].mxu1 %vm49_vm2, %v132_v36 }
 0x17c   :  { %1740 = vmatpush3.bf16.msra.mxu1 %v2084_v6  ;;  %1743 = vmatprep.mubr.msk.bf16.mxu1 %vm2008_vm0, %v2007_v1 }
 0x17d   :  { %1741 = vmatprep.subr.bf16.mxu1 %v2007_v1 }
 0x180   :  { %1742 = vmatpush3.bf16.msra.mxu1 %v2090_v7 }
 0x181   :  { %1755 = vmatprep.subr.bf16.mxu1 %v2007_v1 }
 0x24e   :  { %v182_v37 = vpop.f32.mrb[0].mxu1 }
 0x24f   :  { %v189_v38 = vrot.slane %v182_v37, 1  ;;  %190 = vrot.lane.b32.xlu0 %v182_v37, %s2011_s29  ;;  %v1729_v39 = vpop.f32.mrb[1].mxu1 }
 0x250   :  { %v185_v40 = vpop.f32.mrb[2].mxu1 }
 0x251   :  { %192 = vrot.lane.b32.xlu1 %v189_v38, %s2011_s29  ;;  %v1730_v41 = vpop.f32.mrb[3].mxu1 }
 0x253   :  { %200 = vrot.lane.b32.xlu0 %v2064_v3, %s2011_s29 }
 0x255   :  { %202 = vrot.lane.b32.xlu1 %v112_v5, %s2011_s29 }
 0x2c1   :  { %v191_v42 = vpop.permute.xlu0 %190 }
 0x2c2   :  { %v196_v43 = vadd.f32 %v191_v42, %v2098_v8 }
 0x2c3   :  { %v193_v44 = vpop.permute.xlu1 %192 }
 0x2c4   :  { %1865 = vtanh.f32 %v196_v43  ;;  %v197_v45 = vadd.f32 %v193_v44, %v2103_v9 }
 0x2c5   :  { %v201_v46 = vpop.permute.xlu0 %200 }
 0x2c6   :  { %1867 = vtanh.f32 %v197_v45 }
 0x2c7   :  { %v203_v48 = vpop.permute.xlu1 %202 }
 0x2ce   :  { %v1866_v47 = vpop.eup %1865 }
 0x2cf   :  { %v206_v49 = vsub.f32 %v1866_v47, %v201_v46 }
 0x2d0   :  { %v1868_v50 = vpop.eup %1867 }
 0x2d1   :  { %v207_v51 = vsub.f32 %v1868_v50, %v203_v48  ;;  %210 = vrot.lane.b32.xlu0 %v206_v49, %s2011_s29 }
 0x2d3   :  { %212 = vrot.lane.b32.xlu1 %v207_v51, %s2011_s29 }
 0x343   :  { %v211_v55 = vpop.permute.xlu0 %210 }
 0x344   :  { %v216_v60 = vmul.f32 %v1862_v25, %v211_v55 }
 0x345   :  { %v213_v58 = vpop.permute.xlu1 %212 }
 0x346   :  { %v217_v59 = vmul.f32 %v1864_v27, %v213_v58 }
 0x348   :  { %v220_v61 = vrot.slane %v217_v59, 7 }
 0x34a   :  { %v221_v63 = vsel %vm128_vm3, %v220_v61, %v216_v60 }
 0x34b   :  { %v2131_v4 = vadd.f32 %v221_v63, %v2064_v3 }
 0x34d   :  { %v231_v5 = vrot.slane %v2131_v4, %v2127_v62  ;;  %317 = vrot.lane.b32.xlu0 %v2131_v4, %s2009_s19  ;;  %v314_v10 = vrot.slane %v2131_v4, 7  ;;  %v252_v11 = vpack.c.bf16 %v2131_v4, %v2131_v4 }
 0x34f   :  { %v232_v12 = vcombine.high %v231_v5, %v231_v5  ;;  %v239_v13 = vrot.slane %v231_v5, %v2127_v62  ;;  %315 = vrot.lane.b32.xlu1 %v314_v10, %s2009_s19  ;;  %1736 = vmatmul.mubr.msk.bf16.vlgmr.msra.gmra.mrb[4].mxu0 %vm49_vm2, %v252_v11 }
 0x350   :  { %1748 = vmatpush3.bf16.msra.mxu0 %v2045_v0  ;;  %1751 = vmatprep.mubr.msk.bf16.mxu0 %vm2008_vm0, %v2007_v1 }
 0x351   :  { %v246_v3 = vrot.slane %v232_v12, %v2127_v62  ;;  %250 = vst.msk [vmem:[#allocation3] sm:$0x1] %vm249_vm4, %v239_v13  ;;  %1749 = vmatprep.subr.bf16.mxu0 %v2007_v1 }
 0x353   :  { %251 = vst.msk [vmem:[#allocation3 + $0x8] sm:$0x1] %vm249_vm4, %v246_v3 }
 0x354   :  { %1750 = vmatpush3.bf16.msra.mxu0 %v2053_v2 }
 0x355   :  { %1763 = vmatprep.subr.bf16.mxu0 %v2007_v1 }
 0x3bf   :  { %v318_v28 = vpop.permute.xlu0 %317 }
 0x3c1   :  { %v316_v31 = vpop.permute.xlu1 %315 }
 0x422   :  { %v290_v14 = vpop.f32.mrb[4].mxu0 }
 0x423   :  { %v297_v15 = vrot.slane %v290_v14, 7  ;;  %v301_v16 = vadd.f32 %v290_v14, %v2103_v9  ;;  %v1737_v17 = vpop.f32.mrb[5].mxu0 }
 0x424   :  { %v293_v18 = vpop.f32.mrb[6].mxu0 }
 0x425   :  { %v300_v19 = vadd.f32 %v297_v15, %v2098_v8  ;;  %v1641_v20 = vmul.f32 -1.442695, %v301_v16  ;;  %v1738_v21 = vpop.f32.mrb[7].mxu0 }
 0x427   :  { %v1640_v22 = vmul.f32 -1.442695, %v300_v19  ;;  %1869 = vpow2.f32 %v1641_v20 }
 0x429   :  { %1871 = vpow2.f32 %v1640_v22 }
 0x431   :  { %v1870_v23 = vpop.eup %1869 }
 0x432   :  { %v309_v24 = vadd.f32 1.0, %v1870_v23 }
 0x433   :  { %v1872_v25 = vpop.eup %1871 }
 0x434   :  { %v308_v26 = vadd.f32 1.0, %v1872_v25  ;;  %1873 = vrcp.f32 %v309_v24 }
 0x436   :  { %1875 = vrcp.f32 %v308_v26 }
 0x43e   :  { %v1874_v27 = vpop.eup %1873 }
 0x43f   :  { %v322_v29 = vmul.f32 %v1874_v27, %v318_v28 }
 0x440   :  { %v1876_v30 = vpop.eup %1875 }
 0x441   :  { %v321_v32 = vmul.f32 %v1876_v30, %v316_v31  ;;  %v324_v34 = vpack.c.bf16 %v322_v29, %v322_v29 }
 0x443   :  { %v323_v33 = vpack.c.bf16 %v321_v32, %v321_v32  ;;  %v328_v36 = vunpack.c.l.b16 %v324_v34 }
 0x445   :  { %v327_v35 = vunpack.c.l.b16 %v323_v33 }
 0x447   :  { %v329_v37 = vrot.slane %v327_v35, 1 }
 0x449   :  { %v330_v38 = vsel %vm128_vm3, %v328_v36, %v329_v37 }
 0x44a   :  { %v331_v39 = vpack.c.b16 %v330_v38, %v330_v38 }
 0x44c   :  { %332 = vrot.lane.b32.xlu1 %v331_v39, %s2010_s28 }
 0x4be   :  { %v333_v40 = vpop.permute.xlu1 %332 }
 0x4bf   :  { %1744 = vmatmul.mubr.msk.bf16.vlgmr.msra.gmra.mrb[4].mxu1 %vm49_vm2, %v333_v40 }
 0x4c0   :  { %1756 = vmatpush3.bf16.msra.mxu1 %v2084_v6  ;;  %1759 = vmatprep.mubr.msk.bf16.mxu1 %vm2008_vm0, %v2007_v1 }
 0x4c1   :  { %1757 = vmatprep.subr.bf16.mxu1 %v2007_v1 }
 0x4c4   :  { %1758 = vmatpush3.bf16.msra.mxu1 %v2090_v7 }
 0x4c5   :  { %1771 = vmatprep.subr.bf16.mxu1 %v2007_v1 }
 0x592   :  { %v371_v41 = vpop.f32.mrb[4].mxu1 }
 0x593   :  { %v378_v42 = vrot.slane %v371_v41, 7  ;;  %381 = vrot.lane.b32.xlu1 %v371_v41, %s2011_s29  ;;  %v1745_v43 = vpop.f32.mrb[5].mxu1 }
 0x594   :  { %v374_v44 = vpop.f32.mrb[6].mxu1 }
 0x595   :  { %379 = vrot.lane.b32.xlu0 %v378_v42, %s2011_s29  ;;  %v1746_v45 = vpop.f32.mrb[7].mxu1 }
 0x597   :  { %391 = vrot.lane.b32.xlu1 %v2131_v4, %s2011_s29 }
 0x599   :  { %389 = vrot.lane.b32.xlu0 %v314_v10, %s2011_s29 }
 0x605   :  { %v382_v46 = vpop.permute.xlu1 %381 }
 0x606   :  { %v386_v47 = vadd.f32 %v382_v46, %v2103_v9 }
 0x607   :  { %v380_v48 = vpop.permute.xlu0 %379 }
 0x608   :  { %1877 = vtanh.f32 %v386_v47  ;;  %v385_v49 = vadd.f32 %v380_v48, %v2098_v8 }
 0x609   :  { %v392_v51 = vpop.permute.xlu1 %391 }
 0x60a   :  { %1879 = vtanh.f32 %v385_v49 }
 0x60b   :  { %v390_v54 = vpop.permute.xlu0 %389 }
 0x612   :  { %v1878_v50 = vpop.eup %1877 }
 0x613   :  { %v396_v52 = vsub.f32 %v1878_v50, %v392_v51 }
 0x614   :  { %v1880_v53 = vpop.eup %1879 }
 0x615   :  { %v395_v55 = vsub.f32 %v1880_v53, %v390_v54  ;;  %401 = vrot.lane.b32.xlu1 %v396_v52, %s2011_s29 }
 0x617   :  { %399 = vrot.lane.b32.xlu0 %v395_v55, %s2011_s29 }
 0x687   :  { %v402_v56 = vpop.permute.xlu1 %401 }
 0x688   :  { %v406_v59 = vmul.f32 %v1874_v27, %v402_v56 }
 0x689   :  { %v400_v57 = vpop.permute.xlu0 %399 }
 0x68a   :  { %v405_v58 = vmul.f32 %v1876_v30, %v400_v57 }
 0x68c   :  { %v409_v60 = vrot.slane %v405_v58, 1 }
 0x68e   :  { %v410_v61 = vsel %vm128_vm3, %v406_v59, %v409_v60 }
 0x68f   :  { %v2174_v63 = vadd.f32 %v410_v61, %v2131_v4 }
 0x691   :  { %v420_v5 = vrot.slane %v2174_v63, %v2127_v62  ;;  %v504_v10 = vrot.slane %v2174_v63, 7  ;;  %v503_v11 = vrot.slane %v2174_v63, 6  ;;  %v440_v12 = vpack.c.bf16 %v2174_v63, %v2174_v63 }
 0x693   :  { %v421_v13 = vcombine.high %v420_v5, %v420_v5  ;;  %v428_v3 = vrot.slane %v420_v5, %v2127_v62  ;;  %507 = vrot.lane.b32.xlu1 %v504_v10, %s2009_s19  ;;  %505 = vrot.lane.b32.xlu0 %v503_v11, %s2009_s19 }
 0x694   :  { %1752 = vmatmul.mubr.msk.bf16.vlgmr.msra.gmra.mrb[8].mxu0 %vm49_vm2, %v440_v12 }
 0x695   :  { %v435_v4 = vrot.slane %v421_v13, %v2127_v62  ;;  %438 = vst.msk [vmem:[#allocation3 + $0x1] sm:$0x1] %vm249_vm4, %v428_v3  ;;  %1764 = vmatpush3.bf16.msra.mxu0 %v2045_v0  ;;  %1767 = vmatprep.mubr.msk.bf16.mxu0 %vm2008_vm0, %v2007_v1 }
 0x696   :  { %1765 = vmatprep.subr.bf16.mxu0 %v2007_v1 }
 0x697   :  { %439 = vst.msk [vmem:[#allocation3 + $0x9] sm:$0x1] %vm249_vm4, %v435_v4 }
 0x699   :  { %1766 = vmatpush3.bf16.msra.mxu0 %v2053_v2 }
 0x69a   :  { %1779 = vmatprep.subr.bf16.mxu0 %v2007_v1 }
 0x705   :  { %v506_v29 = vpop.permute.xlu0 %505  ;;  %v508_v31 = vpop.permute.xlu1 %507 }
 0x767   :  { %v478_v14 = vpop.f32.mrb[8].mxu0 }
 0x768   :  { %v485_v15 = vrot.slane %v478_v14, 6  ;;  %v486_v16 = vrot.slane %v478_v14, 7  ;;  %v1753_v17 = vpop.f32.mrb[9].mxu0 }
 0x769   :  { %v481_v18 = vpop.f32.mrb[10].mxu0 }
 0x76a   :  { %v489_v19 = vadd.f32 %v485_v15, %v2098_v8  ;;  %v490_v20 = vadd.f32 %v486_v16, %v2103_v9  ;;  %v1754_v21 = vpop.f32.mrb[11].mxu0 }
 0x76c   :  { %v1644_v22 = vmul.f32 -1.442695, %v489_v19  ;;  %v1645_v23 = vmul.f32 -1.442695, %v490_v20 }
 0x76e   :  { %1881 = vpow2.f32 %v1644_v22 }
 0x76f   :  { %1883 = vpow2.f32 %v1645_v23 }
 0x778   :  { %v1882_v24 = vpop.eup %1881 }
 0x779   :  { %v1884_v25 = vpop.eup %1883  ;;  %v497_v26 = vadd.f32 1.0, %v1882_v24 }
 0x77a   :  { %v498_v27 = vadd.f32 1.0, %v1884_v25 }
 0x77b   :  { %1885 = vrcp.f32 %v497_v26 }
 0x77c   :  { %1887 = vrcp.f32 %v498_v27 }
 0x785   :  { %v1886_v28 = vpop.eup %1885 }
 0x786   :  { %v1888_v30 = vpop.eup %1887  ;;  %v511_v32 = vmul.f32 %v1886_v28, %v506_v29 }
 0x787   :  { %v512_v33 = vmul.f32 %v1888_v30, %v508_v31 }
 0x788   :  { %v513_v34 = vpack.c.bf16 %v511_v32, %v511_v32 }
 0x789   :  { %v514_v35 = vpack.c.bf16 %v512_v33, %v512_v33 }
 0x78a   :  { %v517_v36 = vunpack.c.l.b16 %v513_v34 }
 0x78b   :  { %v518_v37 = vunpack.c.l.b16 %v514_v35 }
 0x78c   :  { %v519_v38 = vrot.slane %v517_v36, 2 }
 0x78d   :  { %v520_v39 = vrot.slane %v518_v37, 1 }
 0x78f   :  { %v521_v40 = vsel %vm128_vm3, %v520_v39, %v519_v38 }
 0x790   :  { %v522_v41 = vpack.c.b16 %v521_v40, %v521_v40 }
 0x792   :  { %523 = vrot.lane.b32.xlu0 %v522_v41, %s2010_s28 }
 0x804   :  { %v524_v42 = vpop.permute.xlu0 %523 }
 0x805   :  { %1760 = vmatmul.mubr.msk.bf16.vlgmr.msra.gmra.mrb[8].mxu1 %vm49_vm2, %v524_v42 }
 0x806   :  { %1772 = vmatpush3.bf16.msra.mxu1 %v2084_v6  ;;  %1775 = vmatprep.mubr.msk.bf16.mxu1 %vm2008_vm0, %v2007_v1 }
 0x807   :  { %1773 = vmatprep.subr.bf16.mxu1 %v2007_v1 }
 0x80a   :  { %1774 = vmatpush3.bf16.msra.mxu1 %v2090_v7 }
 0x80b   :  { %1787 = vmatprep.subr.bf16.mxu1 %v2007_v1 }
 0x8d8   :  { %v562_v43 = vpop.f32.mrb[8].mxu1 }
 0x8d9   :  { %v569_v44 = vrot.slane %v562_v43, 6  ;;  %v570_v45 = vrot.slane %v562_v43, 7  ;;  %v1761_v46 = vpop.f32.mrb[9].mxu1 }
 0x8da   :  { %v565_v47 = vpop.f32.mrb[10].mxu1 }
 0x8db   :  { %573 = vrot.lane.b32.xlu0 %v570_v45, %s2011_s29  ;;  %571 = vrot.lane.b32.xlu1 %v569_v44, %s2011_s29  ;;  %v1762_v48 = vpop.f32.mrb[11].mxu1 }
 0x8df   :  { %583 = vrot.lane.b32.xlu0 %v504_v10, %s2011_s29  ;;  %581 = vrot.lane.b32.xlu1 %v503_v11, %s2011_s29 }
 0x94d   :  { %v574_v49 = vpop.permute.xlu0 %573  ;;  %v572_v50 = vpop.permute.xlu1 %571 }
 0x94e   :  { %v578_v51 = vadd.f32 %v574_v49, %v2103_v9  ;;  %v577_v52 = vadd.f32 %v572_v50, %v2098_v8 }
 0x950   :  { %1889 = vtanh.f32 %v578_v51 }
 0x951   :  { %1891 = vtanh.f32 %v577_v52  ;;  %v584_v54 = vpop.permute.xlu0 %583  ;;  %v582_v57 = vpop.permute.xlu1 %581 }
 0x95a   :  { %v1890_v53 = vpop.eup %1889 }
 0x95b   :  { %v1892_v55 = vpop.eup %1891  ;;  %v588_v56 = vsub.f32 %v1890_v53, %v584_v54 }
 0x95c   :  { %v587_v58 = vsub.f32 %v1892_v55, %v582_v57 }
 0x95d   :  { %593 = vrot.lane.b32.xlu0 %v588_v56, %s2011_s29 }
 0x95e   :  { %591 = vrot.lane.b32.xlu1 %v587_v58, %s2011_s29 }
 0x9cf   :  { %v594_v59 = vpop.permute.xlu0 %593 }
 0x9d0   :  { %v598_v60 = vmul.f32 %v1888_v30, %v594_v59  ;;  %v592_v61 = vpop.permute.xlu1 %591 }
 0x9d1   :  { %v597_v5 = vmul.f32 %v1886_v28, %v592_v61 }
 0x9d2   :  { %v602_v10 = vrot.slane %v598_v60, 1 }
 0x9d3   :  { %v601_v11 = vrot.slane %v597_v5, 2 }
 0x9d5   :  { %v603_v12 = vsel %vm128_vm3, %v602_v10, %v601_v11 }
 0x9d6   :  { %v2224_v13 = vadd.f32 %v603_v12, %v2174_v63 }
 0x9d8   :  { %v613_v3 = vrot.slane %v2224_v13, %v2127_v62  ;;  %v697_v4 = vrot.slane %v2224_v13, 6  ;;  %v696_v14 = vrot.slane %v2224_v13, 5  ;;  %v633_v15 = vpack.c.bf16 %v2224_v13, %v2224_v13 }
 0x9da   :  { %v614_v16 = vcombine.high %v613_v3, %v613_v3  ;;  %v621_v17 = vrot.slane %v613_v3, %v2127_v62  ;;  %700 = vrot.lane.b32.xlu0 %v697_v4, %s2009_s19  ;;  %698 = vrot.lane.b32.xlu1 %v696_v14, %s2009_s19 }
 0x9db   :  { %1768 = vmatmul.mubr.msk.bf16.vlgmr.msra.gmra.mrb[12].mxu0 %vm49_vm2, %v633_v15 }
 0x9dc   :  { %v628_v63 = vrot.slane %v614_v16, %v2127_v62  ;;  %631 = vst.msk [vmem:[#allocation3 + $0x2] sm:$0x1] %vm249_vm4, %v621_v17  ;;  %1780 = vmatpush3.bf16.msra.mxu0 %v2045_v0  ;;  %1783 = vmatprep.mubr.msk.bf16.mxu0 %vm2008_vm0, %v2007_v1 }
 0x9dd   :  { %1781 = vmatprep.subr.bf16.mxu0 %v2007_v1 }
 0x9de   :  { %632 = vst.msk [vmem:[#allocation3 + $0xa] sm:$0x1] %vm249_vm4, %v628_v63 }
 0x9e0   :  { %1782 = vmatpush3.bf16.msra.mxu0 %v2053_v2 }
 0x9e1   :  { %1795 = vmatprep.subr.bf16.mxu0 %v2007_v1 }
 0xa4c   :  { %v699_v33 = vpop.permute.xlu1 %698  ;;  %v701_v35 = vpop.permute.xlu0 %700 }
 0xaae   :  { %v671_v18 = vpop.f32.mrb[12].mxu0 }
 0xaaf   :  { %v678_v19 = vrot.slane %v671_v18, 5  ;;  %v679_v20 = vrot.slane %v671_v18, 6  ;;  %v1769_v21 = vpop.f32.mrb[13].mxu0 }
 0xab0   :  { %v674_v22 = vpop.f32.mrb[14].mxu0 }
 0xab1   :  { %v682_v23 = vadd.f32 %v678_v19, %v2098_v8  ;;  %v683_v24 = vadd.f32 %v679_v20, %v2103_v9  ;;  %v1770_v25 = vpop.f32.mrb[15].mxu0 }
 0xab3   :  { %v1648_v26 = vmul.f32 -1.442695, %v682_v23  ;;  %v1649_v27 = vmul.f32 -1.442695, %v683_v24 }
 0xab5   :  { %1893 = vpow2.f32 %v1648_v26 }
 0xab6   :  { %1895 = vpow2.f32 %v1649_v27 }
 0xabf   :  { %v1894_v28 = vpop.eup %1893 }
 0xac0   :  { %v1896_v29 = vpop.eup %1895  ;;  %v690_v30 = vadd.f32 1.0, %v1894_v28 }
 0xac1   :  { %v691_v31 = vadd.f32 1.0, %v1896_v29 }
 0xac2   :  { %1897 = vrcp.f32 %v690_v30 }
 0xac3   :  { %1899 = vrcp.f32 %v691_v31 }
 0xacc   :  { %v1898_v32 = vpop.eup %1897 }
 0xacd   :  { %v1900_v34 = vpop.eup %1899  ;;  %v704_v36 = vmul.f32 %v1898_v32, %v699_v33 }
 0xace   :  { %v705_v37 = vmul.f32 %v1900_v34, %v701_v35 }
 0xacf   :  { %v706_v38 = vpack.c.bf16 %v704_v36, %v704_v36 }
 0xad0   :  { %v707_v39 = vpack.c.bf16 %v705_v37, %v705_v37 }
 0xad1   :  { %v710_v40 = vunpack.c.l.b16 %v706_v38 }
 0xad2   :  { %v711_v41 = vunpack.c.l.b16 %v707_v39 }
 0xad3   :  { %v712_v42 = vrot.slane %v710_v40, 3 }
 0xad4   :  { %v713_v43 = vrot.slane %v711_v41, 2 }
 0xad6   :  { %v714_v44 = vsel %vm128_vm3, %v713_v43, %v712_v42 }
 0xad7   :  { %v715_v45 = vpack.c.b16 %v714_v44, %v714_v44 }
 0xad9   :  { %716 = vrot.lane.b32.xlu1 %v715_v45, %s2010_s28 }
 0xb4b   :  { %v717_v46 = vpop.permute.xlu1 %716 }
 0xb4c   :  { %1776 = vmatmul.mubr.msk.bf16.vlgmr.msra.gmra.mrb[12].mxu1 %vm49_vm2, %v717_v46 }
 0xb4d   :  { %1788 = vmatpush3.bf16.msra.mxu1 %v2084_v6  ;;  %1791 = vmatprep.mubr.msk.bf16.mxu1 %vm2008_vm0, %v2007_v1 }
 0xb4e   :  { %1789 = vmatprep.subr.bf16.mxu1 %v2007_v1 }
 0xb51   :  { %1790 = vmatpush3.bf16.msra.mxu1 %v2090_v7 }
 0xb52   :  { %1803 = vmatprep.subr.bf16.mxu1 %v2007_v1 }
 0xc1f   :  { %v755_v47 = vpop.f32.mrb[12].mxu1 }
 0xc20   :  { %v762_v48 = vrot.slane %v755_v47, 5  ;;  %v763_v49 = vrot.slane %v755_v47, 6  ;;  %v1777_v50 = vpop.f32.mrb[13].mxu1 }
 0xc21   :  { %v758_v51 = vpop.f32.mrb[14].mxu1 }
 0xc22   :  { %766 = vrot.lane.b32.xlu1 %v763_v49, %s2011_s29  ;;  %764 = vrot.lane.b32.xlu0 %v762_v48, %s2011_s29  ;;  %v1778_v52 = vpop.f32.mrb[15].mxu1 }
 0xc26   :  { %776 = vrot.lane.b32.xlu1 %v697_v4, %s2011_s29  ;;  %774 = vrot.lane.b32.xlu0 %v696_v14, %s2011_s29 }
 0xc94   :  { %v767_v53 = vpop.permute.xlu1 %766  ;;  %v765_v54 = vpop.permute.xlu0 %764 }
 0xc95   :  { %v771_v55 = vadd.f32 %v767_v53, %v2103_v9  ;;  %v770_v56 = vadd.f32 %v765_v54, %v2098_v8 }
 0xc97   :  { %1901 = vtanh.f32 %v771_v55 }
 0xc98   :  { %1903 = vtanh.f32 %v770_v56  ;;  %v777_v58 = vpop.permute.xlu1 %776  ;;  %v775_v61 = vpop.permute.xlu0 %774 }
 0xca1   :  { %v1902_v57 = vpop.eup %1901 }
 0xca2   :  { %v1904_v59 = vpop.eup %1903  ;;  %v781_v60 = vsub.f32 %v1902_v57, %v777_v58 }
 0xca3   :  { %v780_v5 = vsub.f32 %v1904_v59, %v775_v61 }
 0xca4   :  { %786 = vrot.lane.b32.xlu1 %v781_v60, %s2011_s29 }
 0xca5   :  { %784 = vrot.lane.b32.xlu0 %v780_v5, %s2011_s29 }
 0xd16   :  { %v787_v10 = vpop.permute.xlu1 %786 }
 0xd17   :  { %v791_v11 = vmul.f32 %v1900_v34, %v787_v10  ;;  %v785_v12 = vpop.permute.xlu0 %784 }
 0xd18   :  { %v790_v3 = vmul.f32 %v1898_v32, %v785_v12 }
 0xd19   :  { %v795_v4 = vrot.slane %v791_v11, 2 }
 0xd1a   :  { %v794_v14 = vrot.slane %v790_v3, 3 }
 0xd1c   :  { %v796_v15 = vsel %vm128_vm3, %v795_v4, %v794_v14 }
 0xd1d   :  { %v2274_v16 = vadd.f32 %v796_v15, %v2224_v13 }
 0xd1f   :  { %v806_v17 = vrot.slane %v2274_v16, %v2127_v62  ;;  %v890_v63 = vrot.slane %v2274_v16, 5  ;;  %v889_v18 = vrot.slane %v2274_v16, 4  ;;  %v826_v19 = vpack.c.bf16 %v2274_v16, %v2274_v16 }
 0xd21   :  { %v807_v20 = vcombine.high %v806_v17, %v806_v17  ;;  %v814_v21 = vrot.slane %v806_v17, %v2127_v62  ;;  %893 = vrot.lane.b32.xlu1 %v890_v63, %s2009_s19  ;;  %891 = vrot.lane.b32.xlu0 %v889_v18, %s2009_s19 }
 0xd22   :  { %1784 = vmatmul.mubr.msk.bf16.vlgmr.msra.gmra.mrb[16].mxu0 %vm49_vm2, %v826_v19 }
 0xd23   :  { %v821_v13 = vrot.slane %v807_v20, %v2127_v62  ;;  %824 = vst.msk [vmem:[#allocation3 + $0x3] sm:$0x1] %vm249_vm4, %v814_v21  ;;  %1796 = vmatpush3.bf16.msra.mxu0 %v2045_v0  ;;  %1799 = vmatprep.mubr.msk.bf16.mxu0 %vm2008_vm0, %v2007_v1 }
 0xd24   :  { %1797 = vmatprep.subr.bf16.mxu0 %v2007_v1 }
 0xd25   :  { %825 = vst.msk [vmem:[#allocation3 + $0xb] sm:$0x1] %vm249_vm4, %v821_v13 }
 0xd27   :  { %1798 = vmatpush3.bf16.msra.mxu0 %v2053_v2 }
 0xd28   :  { %1811 = vmatprep.subr.bf16.mxu0 %v2007_v1 }
 0xd93   :  { %v892_v37 = vpop.permute.xlu0 %891  ;;  %v894_v39 = vpop.permute.xlu1 %893 }
 0xdf5   :  { %v864_v22 = vpop.f32.mrb[16].mxu0 }
 0xdf6   :  { %v871_v23 = vrot.slane %v864_v22, 4  ;;  %v872_v24 = vrot.slane %v864_v22, 5  ;;  %v1785_v25 = vpop.f32.mrb[17].mxu0 }
 0xdf7   :  { %v867_v26 = vpop.f32.mrb[18].mxu0 }
 0xdf8   :  { %v875_v27 = vadd.f32 %v871_v23, %v2098_v8  ;;  %v876_v28 = vadd.f32 %v872_v24, %v2103_v9  ;;  %v1786_v29 = vpop.f32.mrb[19].mxu0 }
 0xdfa   :  { %v1652_v30 = vmul.f32 -1.442695, %v875_v27  ;;  %v1653_v31 = vmul.f32 -1.442695, %v876_v28 }
 0xdfc   :  { %1905 = vpow2.f32 %v1652_v30 }
 0xdfd   :  { %1907 = vpow2.f32 %v1653_v31 }
 0xe06   :  { %v1906_v32 = vpop.eup %1905 }
 0xe07   :  { %v1908_v33 = vpop.eup %1907  ;;  %v883_v34 = vadd.f32 1.0, %v1906_v32 }
 0xe08   :  { %v884_v35 = vadd.f32 1.0, %v1908_v33 }
 0xe09   :  { %1909 = vrcp.f32 %v883_v34 }
 0xe0a   :  { %1911 = vrcp.f32 %v884_v35 }
 0xe13   :  { %v1910_v36 = vpop.eup %1909 }
 0xe14   :  { %v1912_v38 = vpop.eup %1911  ;;  %v897_v40 = vmul.f32 %v1910_v36, %v892_v37 }
 0xe15   :  { %v898_v41 = vmul.f32 %v1912_v38, %v894_v39 }
 0xe16   :  { %v899_v42 = vpack.c.bf16 %v897_v40, %v897_v40 }
 0xe17   :  { %v900_v43 = vpack.c.bf16 %v898_v41, %v898_v41 }
 0xe18   :  { %v903_v44 = vunpack.c.l.b16 %v899_v42 }
 0xe19   :  { %v904_v45 = vunpack.c.l.b16 %v900_v43 }
 0xe1a   :  { %v905_v46 = vrot.slane %v903_v44, 4 }
 0xe1b   :  { %v906_v47 = vrot.slane %v904_v45, 3 }
 0xe1d   :  { %v907_v48 = vsel %vm128_vm3, %v906_v47, %v905_v46 }
 0xe1e   :  { %v908_v49 = vpack.c.b16 %v907_v48, %v907_v48 }
 0xe20   :  { %909 = vrot.lane.b32.xlu0 %v908_v49, %s2010_s28 }
 0xe92   :  { %v910_v50 = vpop.permute.xlu0 %909 }
 0xe93   :  { %1792 = vmatmul.mubr.msk.bf16.vlgmr.msra.gmra.mrb[16].mxu1 %vm49_vm2, %v910_v50 }
 0xe94   :  { %1804 = vmatpush3.bf16.msra.mxu1 %v2084_v6  ;;  %1807 = vmatprep.mubr.msk.bf16.mxu1 %vm2008_vm0, %v2007_v1 }
 0xe95   :  { %1805 = vmatprep.subr.bf16.mxu1 %v2007_v1 }
 0xe98   :  { %1806 = vmatpush3.bf16.msra.mxu1 %v2090_v7 }
 0xe99   :  { %1819 = vmatprep.subr.bf16.mxu1 %v2007_v1 }
 0xf66   :  { %v948_v51 = vpop.f32.mrb[16].mxu1 }
 0xf67   :  { %v955_v52 = vrot.slane %v948_v51, 4  ;;  %v956_v53 = vrot.slane %v948_v51, 5  ;;  %v1793_v54 = vpop.f32.mrb[17].mxu1 }
 0xf68   :  { %v951_v55 = vpop.f32.mrb[18].mxu1 }
 0xf69   :  { %959 = vrot.lane.b32.xlu0 %v956_v53, %s2011_s29  ;;  %957 = vrot.lane.b32.xlu1 %v955_v52, %s2011_s29  ;;  %v1794_v56 = vpop.f32.mrb[19].mxu1 }
 0xf6d   :  { %969 = vrot.lane.b32.xlu0 %v890_v63, %s2011_s29  ;;  %967 = vrot.lane.b32.xlu1 %v889_v18, %s2011_s29 }
 0xfdb   :  { %v960_v57 = vpop.permute.xlu0 %959  ;;  %v958_v58 = vpop.permute.xlu1 %957 }
 0xfdc   :  { %v964_v59 = vadd.f32 %v960_v57, %v2103_v9  ;;  %v963_v60 = vadd.f32 %v958_v58, %v2098_v8 }
 0xfde   :  { %1913 = vtanh.f32 %v964_v59 }
 0xfdf   :  { %1915 = vtanh.f32 %v963_v60  ;;  %v970_v5 = vpop.permute.xlu0 %969  ;;  %v968_v12 = vpop.permute.xlu1 %967 }
 0xfe8   :  { %v1914_v61 = vpop.eup %1913 }
 0xfe9   :  { %v1916_v10 = vpop.eup %1915  ;;  %v974_v11 = vsub.f32 %v1914_v61, %v970_v5 }
 0xfea   :  { %v973_v3 = vsub.f32 %v1916_v10, %v968_v12 }
 0xfeb   :  { %979 = vrot.lane.b32.xlu0 %v974_v11, %s2011_s29 }
 0xfec   :  { %977 = vrot.lane.b32.xlu1 %v973_v3, %s2011_s29 }
0x105d   :  { %v980_v4 = vpop.permute.xlu0 %979 }
0x105e   :  { %v984_v14 = vmul.f32 %v1912_v38, %v980_v4  ;;  %v978_v15 = vpop.permute.xlu1 %977 }
0x105f   :  { %v983_v17 = vmul.f32 %v1910_v36, %v978_v15 }
0x1060   :  { %v988_v63 = vrot.slane %v984_v14, 3 }
0x1061   :  { %v987_v18 = vrot.slane %v983_v17, 4 }
0x1063   :  { %v989_v19 = vsel %vm128_vm3, %v988_v63, %v987_v18 }
0x1064   :  { %v2324_v20 = vadd.f32 %v989_v19, %v2274_v16 }
0x1066   :  { %v999_v21 = vrot.slane %v2324_v20, %v2127_v62  ;;  %v1083_v13 = vrot.slane %v2324_v20, 4  ;;  %v1082_v22 = vrot.slane %v2324_v20, 3  ;;  %v1019_v23 = vpack.c.bf16 %v2324_v20, %v2324_v20 }
0x1068   :  { %v1000_v24 = vcombine.high %v999_v21, %v999_v21  ;;  %v1007_v25 = vrot.slane %v999_v21, %v2127_v62  ;;  %1086 = vrot.lane.b32.xlu0 %v1083_v13, %s2009_s19  ;;  %1084 = vrot.lane.b32.xlu1 %v1082_v22, %s2009_s19 }
0x1069   :  { %1800 = vmatmul.mubr.msk.bf16.vlgmr.msra.gmra.mrb[20].mxu0 %vm49_vm2, %v1019_v23 }
0x106a   :  { %v1014_v16 = vrot.slane %v1000_v24, %v2127_v62  ;;  %1017 = vst.msk [vmem:[#allocation3 + $0x4] sm:$0x1] %vm249_vm4, %v1007_v25  ;;  %1812 = vmatpush3.bf16.msra.mxu0 %v2045_v0  ;;  %1815 = vmatprep.mubr.msk.bf16.mxu0 %vm2008_vm0, %v2007_v1  ;;  %v1953_v25 = vld [vmem:[%s2502_s1] sm:$0xff]  }
0x106b   :  { %1813 = vmatprep.subr.bf16.mxu0 %v2007_v1 }
0x106c   :  { %1018 = vst.msk [vmem:[#allocation3 + $0xc] sm:$0x1] %vm249_vm4, %v1014_v16  ;;  %v1954_v16 = vld [vmem:[%s2502_s1 + $0x8] sm:$0xff]  }
0x106e   :  { %1814 = vmatpush3.bf16.msra.mxu0 %v2053_v2 }
0x106f   :  { %1827 = vmatprep.subr.bf16.mxu0 %v2007_v1 }
0x10da   :  { %v1085_v39 = vpop.permute.xlu1 %1084  ;;  %v1087_v41 = vpop.permute.xlu0 %1086 }
0x113c   :  { %v1057_v26 = vpop.f32.mrb[20].mxu0 }
0x113d   :  { %v1064_v27 = vrot.slane %v1057_v26, 3  ;;  %v1065_v28 = vrot.slane %v1057_v26, 4  ;;  %v1801_v29 = vpop.f32.mrb[21].mxu0 }
0x113e   :  { %v1060_v30 = vpop.f32.mrb[22].mxu0 }
0x113f   :  { %v1068_v31 = vadd.f32 %v1064_v27, %v2098_v8  ;;  %v1069_v0 = vadd.f32 %v1065_v28, %v2103_v9  ;;  %v1802_v32 = vpop.f32.mrb[23].mxu0 }
0x1140   :  { %v2411_v32 = vld [vmem:[%s2501_s0 + $0x8] sm:$0xff] }
0x1141   :  { %v1656_v33 = vmul.f32 -1.442695, %v1068_v31  ;;  %v1657_v34 = vmul.f32 -1.442695, %v1069_v0  ;;  %v2405_v31 = vld [vmem:[%s2501_s0] sm:$0xff] }
0x1143   :  { %1917 = vpow2.f32 %v1656_v33 }
0x1144   :  { %1919 = vpow2.f32 %v1657_v34 }
0x114d   :  { %v1918_v35 = vpop.eup %1917 }
0x114e   :  { %v1920_v36 = vpop.eup %1919  ;;  %v1076_v37 = vadd.f32 1.0, %v1918_v35 }
0x114f   :  { %v1077_v2 = vadd.f32 1.0, %v1920_v36 }
0x1150   :  { %1921 = vrcp.f32 %v1076_v37 }
0x1151   :  { %1923 = vrcp.f32 %v1077_v2 }
0x115a   :  { %v1922_v38 = vpop.eup %1921 }
0x115b   :  { %v1924_v40 = vpop.eup %1923  ;;  %v1090_v42 = vmul.f32 %v1922_v38, %v1085_v39 }
0x115c   :  { %v1091_v43 = vmul.f32 %v1924_v40, %v1087_v41 }
0x115d   :  { %v1092_v44 = vpack.c.bf16 %v1090_v42, %v1090_v42 }
0x115e   :  { %v1093_v45 = vpack.c.bf16 %v1091_v43, %v1091_v43 }
0x115f   :  { %v1096_v46 = vunpack.c.l.b16 %v1092_v44 }
0x1160   :  { %v1097_v47 = vunpack.c.l.b16 %v1093_v45 }
0x1161   :  { %v1098_v48 = vrot.slane %v1096_v46, 5 }
0x1162   :  { %v1099_v49 = vrot.slane %v1097_v47, 4 }
0x1164   :  { %v1100_v50 = vsel %vm128_vm3, %v1099_v49, %v1098_v48 }
0x1165   :  { %v1101_v51 = vpack.c.b16 %v1100_v50, %v1100_v50 }
0x1167   :  { %1102 = vrot.lane.b32.xlu1 %v1101_v51, %s2010_s28 }
0x11d9   :  { %v1103_v52 = vpop.permute.xlu1 %1102 }
0x11da   :  { %1808 = vmatmul.mubr.msk.bf16.vlgmr.msra.gmra.mrb[20].mxu1 %vm49_vm2, %v1103_v52 }
0x11db   :  { %1820 = vmatpush3.bf16.msra.mxu1 %v2084_v6  ;;  %1823 = vmatprep.mubr.msk.bf16.mxu1 %vm2008_vm0, %v2007_v1 }
0x11dc   :  { %1821 = vmatprep.subr.bf16.mxu1 %v2007_v1 }
0x11df   :  { %1822 = vmatpush3.bf16.msra.mxu1 %v2090_v7 }
0x11e0   :  { %1835 = vmatprep.subr.bf16.mxu1 %v2007_v1 }
0x12ad   :  { %v1141_v53 = vpop.f32.mrb[20].mxu1 }
0x12ae   :  { %v1148_v54 = vrot.slane %v1141_v53, 3  ;;  %v1149_v55 = vrot.slane %v1141_v53, 4  ;;  %v1809_v56 = vpop.f32.mrb[21].mxu1 }
0x12af   :  { %v1144_v57 = vpop.f32.mrb[22].mxu1  ;;  %v1958_v56 = vld [vmem:[%s2503_s2 + $0x8] sm:$0xff]  }
0x12b0   :  { %1152 = vrot.lane.b32.xlu1 %v1149_v55, %s2011_s29  ;;  %1150 = vrot.lane.b32.xlu0 %v1148_v54, %s2011_s29  ;;  %v1810_v58 = vpop.f32.mrb[23].mxu1  ;;  %v1957_v55 = vld [vmem:[%s2503_s2] sm:$0xff]   ;;  %s2013_s2 = smov [#allocation5]  }
0x12b1   :  { %s1619_s14 = sshll.u32 %s2013_s2, 4  ;;  %s1620_s14 = int_to_ptr.vmem [resolvable:$true] %s1619_s14 }
0x12b2   :  { %s1959_s17 = scalar_lea.vmem %s1620_s14, 32  ;;  %p1964_p1 = scmp.lt.s32.totalorder %s1620_s14, %s1620_s14 }
0x12b3   :  { %p1960_p0 = scmp.ne.s32.totalorder %s1620_s14, %s1959_s17  ;;  %p1965_p2 = scmp.lt.s32.totalorder %s1959_s17, %s1959_s17 }
0x12b4   :  { %1162 = vrot.lane.b32.xlu1 %v1083_v13, %s2011_s29  ;;  %1160 = vrot.lane.b32.xlu0 %v1082_v22, %s2011_s29 }
0x12b5   :  { %p1966_p3 = por %p1965_p2, %p1964_p1 }
0x12b7   :  { %p1967_p4 = pnand %p1966_p3, %p1960_p0 }
0x1322   :  { %v1153_v6 = vpop.permute.xlu1 %1152  ;;  %v1151_v7 = vpop.permute.xlu0 %1150 }
0x1323   :  { %v1157_v59 = vadd.f32 %v1153_v6, %v2103_v9  ;;  %v1156_v60 = vadd.f32 %v1151_v7, %v2098_v8 }
0x1325   :  { %1925 = vtanh.f32 %v1157_v59 }
0x1326   :  { %1927 = vtanh.f32 %v1156_v60  ;;  %v1163_v5 = vpop.permute.xlu1 %1162  ;;  %v1161_v12 = vpop.permute.xlu0 %1160 }
0x132f   :  { %v1926_v61 = vpop.eup %1925 }
0x1330   :  { %v1928_v10 = vpop.eup %1927  ;;  %v1167_v11 = vsub.f32 %v1926_v61, %v1163_v5 }
0x1331   :  { %v1166_v3 = vsub.f32 %v1928_v10, %v1161_v12 }
0x1332   :  { %1172 = vrot.lane.b32.xlu1 %v1167_v11, %s2011_s29 }
0x1333   :  { %1170 = vrot.lane.b32.xlu0 %v1166_v3, %s2011_s29 }
0x13a4   :  { %v1173_v4 = vpop.permute.xlu1 %1172 }
0x13a5   :  { %v1177_v14 = vmul.f32 %v1924_v40, %v1173_v4  ;;  %v1171_v15 = vpop.permute.xlu0 %1170 }
0x13a6   :  { %v1176_v17 = vmul.f32 %v1922_v38, %v1171_v15 }
0x13a7   :  { %v1181_v63 = vrot.slane %v1177_v14, 4 }
0x13a8   :  { %v1180_v9 = vrot.slane %v1176_v17, 5 }
0x13aa   :  { %v1182_v8 = vsel %vm128_vm3, %v1181_v63, %v1180_v9 }
0x13ab   :  { %v2374_v18 = vadd.f32 %v1182_v8, %v2324_v20 }
0x13ad   :  { %v1192_v19 = vrot.slane %v2374_v18, %v2127_v62  ;;  %v1276_v21 = vrot.slane %v2374_v18, 3  ;;  %v1275_v13 = vrot.slane %v2374_v18, 2  ;;  %v1212_v22 = vpack.c.bf16 %v2374_v18, %v2374_v18 }
0x13af   :  { %v1193_v23 = vcombine.high %v1192_v19, %v1192_v19  ;;  %v1200_v24 = vrot.slane %v1192_v19, %v2127_v62  ;;  %1279 = vrot.lane.b32.xlu1 %v1276_v21, %s2009_s19  ;;  %1277 = vrot.lane.b32.xlu0 %v1275_v13, %s2009_s19 }
0x13b0   :  { %1816 = vmatmul.mubr.msk.bf16.vlgmr.msra.gmra.mrb[24].mxu0 %vm49_vm2, %v1212_v22 }
0x13b1   :  { %v1207_v20 = vrot.slane %v1193_v23, %v2127_v62  ;;  %1210 = vst.msk [vmem:[#allocation3 + $0x5] sm:$0x1] %vm249_vm4, %v1200_v24  ;;  %1828 = vmatpush3.bf16.msra.mxu0 %v1953_v25  ;;  %1831 = vmatprep.mubr.msk.bf16.mxu0 %vm2008_vm0, %v2007_v1 }
0x13b2   :  { %1829 = vmatprep.subr.bf16.mxu0 %v2007_v1 }
0x13b3   :  { %1211 = vst.msk [vmem:[#allocation3 + $0xd] sm:$0x1] %vm249_vm4, %v1207_v20 }
0x13b5   :  { %1830 = vmatpush3.bf16.msra.mxu0 %v1954_v16 }
0x1421   :  { %v1278_v41 = vpop.permute.xlu0 %1277  ;;  %v1280_v43 = vpop.permute.xlu1 %1279 }
0x1483   :  { %v1250_v26 = vpop.f32.mrb[24].mxu0 }
0x1484   :  { %v1257_v27 = vrot.slane %v1250_v26, 2  ;;  %v1258_v28 = vrot.slane %v1250_v26, 3  ;;  %v1817_v29 = vpop.f32.mrb[25].mxu0 }
0x1485   :  { %v1253_v30 = vpop.f32.mrb[26].mxu0 }
0x1486   :  { %v1261_v0 = vadd.f32 %v2405_v31, %v1257_v27  ;;  %v1262_v33 = vadd.f32 %v2411_v32, %v1258_v28  ;;  %v1818_v34 = vpop.f32.mrb[27].mxu0 }
0x1488   :  { %v1660_v35 = vmul.f32 -1.442695, %v1261_v0  ;;  %v1661_v36 = vmul.f32 -1.442695, %v1262_v33 }
0x148a   :  { %1929 = vpow2.f32 %v1660_v35 }
0x148b   :  { %1931 = vpow2.f32 %v1661_v36 }
0x1494   :  { %v1930_v37 = vpop.eup %1929 }
0x1495   :  { %v1932_v2 = vpop.eup %1931  ;;  %v1269_v38 = vadd.f32 1.0, %v1930_v37 }
0x1496   :  { %v1270_v39 = vadd.f32 1.0, %v1932_v2 }
0x1497   :  { %1933 = vrcp.f32 %v1269_v38 }
0x1498   :  { %1935 = vrcp.f32 %v1270_v39 }
0x14a1   :  { %v1934_v40 = vpop.eup %1933 }
0x14a2   :  { %v1936_v42 = vpop.eup %1935  ;;  %v1283_v44 = vmul.f32 %v1934_v40, %v1278_v41 }
0x14a3   :  { %v1284_v45 = vmul.f32 %v1936_v42, %v1280_v43 }
0x14a4   :  { %v1285_v46 = vpack.c.bf16 %v1283_v44, %v1283_v44 }
0x14a5   :  { %v1286_v47 = vpack.c.bf16 %v1284_v45, %v1284_v45 }
0x14a6   :  { %v1289_v48 = vunpack.c.l.b16 %v1285_v46 }
0x14a7   :  { %v1290_v49 = vunpack.c.l.b16 %v1286_v47 }
0x14a8   :  { %v1291_v50 = vrot.slane %v1289_v48, 6 }
0x14a9   :  { %v1292_v51 = vrot.slane %v1290_v49, 5 }
0x14ab   :  { %v1293_v52 = vsel %vm128_vm3, %v1292_v51, %v1291_v50 }
0x14ac   :  { %v1294_v53 = vpack.c.b16 %v1293_v52, %v1293_v52 }
0x14ae   :  { %1295 = vrot.lane.b32.xlu0 %v1294_v53, %s2010_s28 }
0x1520   :  { %v1296_v54 = vpop.permute.xlu0 %1295 }
0x1521   :  { %1824 = vmatmul.mubr.msk.bf16.vlgmr.msra.gmra.mrb[24].mxu1 %vm49_vm2, %v1296_v54 }
0x1522   :  { %1836 = vmatpush3.bf16.msra.mxu1 %v1957_v55  ;;  %1839 = vmatprep.mubr.msk.bf16.mxu1 %vm2008_vm0, %v2007_v1 }
0x1523   :  { %1837 = vmatprep.subr.bf16.mxu1 %v2007_v1 }
0x1526   :  { %1838 = vmatpush3.bf16.msra.mxu1 %v1958_v56 }
0x15f4   :  { %v1334_v57 = vpop.f32.mrb[24].mxu1 }
0x15f5   :  { %v1341_v58 = vrot.slane %v1334_v57, 2  ;;  %v1342_v6 = vrot.slane %v1334_v57, 3  ;;  %v1825_v7 = vpop.f32.mrb[25].mxu1 }
0x15f6   :  { %v1337_v59 = vpop.f32.mrb[26].mxu1 }
0x15f7   :  { %1345 = vrot.lane.b32.xlu0 %v1342_v6, %s2011_s29  ;;  %1343 = vrot.lane.b32.xlu1 %v1341_v58, %s2011_s29  ;;  %v1826_v60 = vpop.f32.mrb[27].mxu1 }
0x15fb   :  { %1355 = vrot.lane.b32.xlu0 %v1276_v21, %s2011_s29  ;;  %1353 = vrot.lane.b32.xlu1 %v1275_v13, %s2011_s29 }
0x1669   :  { %v1346_v1 = vpop.permute.xlu0 %1345  ;;  %v1344_v61 = vpop.permute.xlu1 %1343 }
0x166a   :  { %v1350_v5 = vadd.f32 %v2411_v32, %v1346_v1  ;;  %v1349_v10 = vadd.f32 %v2405_v31, %v1344_v61 }
0x166c   :  { %1937 = vtanh.f32 %v1350_v5 }
0x166d   :  { %1939 = vtanh.f32 %v1349_v10  ;;  %v1356_v12 = vpop.permute.xlu0 %1355  ;;  %v1354_v14 = vpop.permute.xlu1 %1353 }
0x1676   :  { %v1938_v11 = vpop.eup %1937 }
0x1677   :  { %v1940_v3 = vpop.eup %1939  ;;  %v1360_v4 = vsub.f32 %v1938_v11, %v1356_v12 }
0x1678   :  { %v1359_v15 = vsub.f32 %v1940_v3, %v1354_v14 }
0x1679   :  { %1365 = vrot.lane.b32.xlu0 %v1360_v4, %s2011_s29 }
0x167a   :  { %1363 = vrot.lane.b32.xlu1 %v1359_v15, %s2011_s29 }
0x16eb   :  { %v1366_v17 = vpop.permute.xlu0 %1365 }
0x16ec   :  { %v1370_v63 = vmul.f32 %v1936_v42, %v1366_v17  ;;  %v1364_v9 = vpop.permute.xlu1 %1363 }
0x16ed   :  { %v1369_v8 = vmul.f32 %v1934_v40, %v1364_v9 }
0x16ee   :  { %v1374_v19 = vrot.slane %v1370_v63, 5 }
0x16ef   :  { %v1373_v21 = vrot.slane %v1369_v8, 6 }
0x16f1   :  { %v1375_v13 = vsel %vm128_vm3, %v1374_v19, %v1373_v21 }
0x16f2   :  { %v2440_v22 = vadd.f32 %v1375_v13, %v2374_v18 }
0x16f4   :  { %v1385_v23 = vrot.slane %v2440_v22, %v2127_v62  ;;  %v1469_v24 = vrot.slane %v2440_v22, 2  ;;  %v1468_v20 = vrot.slane %v2440_v22, 1  ;;  %v1405_v25 = vpack.c.bf16 %v2440_v22, %v2440_v22 }
0x16f6   :  { %v1386_v16 = vcombine.high %v1385_v23, %v1385_v23  ;;  %v1393_v26 = vrot.slane %v1385_v23, %v2127_v62  ;;  %1472 = vrot.lane.b32.xlu0 %v1469_v24, %s2009_s19  ;;  %1470 = vrot.lane.b32.xlu1 %v1468_v20, %s2009_s19 }
0x16f7   :  { %1832 = vmatmul.mubr.msk.bf16.vlgmr.msra.gmra.mrb[28].mxu0 %vm49_vm2, %v1405_v25 }
0x16f8   :  { %v1400_v18 = vrot.slane %v1386_v16, %v2127_v62  ;;  %1403 = vst.msk [vmem:[#allocation3 + $0x6] sm:$0x1] %vm249_vm4, %v1393_v26 }
0x16fa   :  { %1404 = vst.msk [vmem:[#allocation3 + $0xe] sm:$0x1] %vm249_vm4, %v1400_v18 }
0x1768   :  { %v1471_v42 = vpop.permute.xlu1 %1470  ;;  %v1473_v44 = vpop.permute.xlu0 %1472 }
0x17ca   :  { %v1443_v27 = vpop.f32.mrb[28].mxu0 }
0x17cb   :  { %v1450_v28 = vrot.slane %v1443_v27, 1  ;;  %v1451_v29 = vrot.slane %v1443_v27, 2  ;;  %v1833_v30 = vpop.f32.mrb[29].mxu0 }
0x17cc   :  { %v1446_v0 = vpop.f32.mrb[30].mxu0 }
0x17cd   :  { %v1454_v33 = vadd.f32 %v2405_v31, %v1450_v28  ;;  %v1455_v34 = vadd.f32 %v2411_v32, %v1451_v29  ;;  %v1834_v35 = vpop.f32.mrb[31].mxu0 }
0x17cf   :  { %v1664_v36 = vmul.f32 -1.442695, %v1454_v33  ;;  %v1665_v37 = vmul.f32 -1.442695, %v1455_v34 }
0x17d1   :  { %1941 = vpow2.f32 %v1664_v36 }
0x17d2   :  { %1943 = vpow2.f32 %v1665_v37 }
0x17db   :  { %v1942_v2 = vpop.eup %1941 }
0x17dc   :  { %v1944_v38 = vpop.eup %1943  ;;  %v1462_v39 = vadd.f32 1.0, %v1942_v2 }
0x17dd   :  { %v1463_v40 = vadd.f32 1.0, %v1944_v38 }
0x17de   :  { %1945 = vrcp.f32 %v1462_v39 }
0x17df   :  { %1947 = vrcp.f32 %v1463_v40 }
0x17e8   :  { %v1946_v41 = vpop.eup %1945 }
0x17e9   :  { %v1948_v43 = vpop.eup %1947  ;;  %v1476_v45 = vmul.f32 %v1946_v41, %v1471_v42 }
0x17ea   :  { %v1477_v46 = vmul.f32 %v1948_v43, %v1473_v44 }
0x17eb   :  { %v1478_v47 = vpack.c.bf16 %v1476_v45, %v1476_v45 }
0x17ec   :  { %v1479_v48 = vpack.c.bf16 %v1477_v46, %v1477_v46 }
0x17ed   :  { %v1482_v49 = vunpack.c.l.b16 %v1478_v47 }
0x17ee   :  { %v1483_v50 = vunpack.c.l.b16 %v1479_v48 }
0x17ef   :  { %v1484_v51 = vrot.slane %v1482_v49, 7 }
0x17f0   :  { %v1485_v52 = vrot.slane %v1483_v50, 6 }
0x17f2   :  { %v1486_v53 = vsel %vm128_vm3, %v1485_v52, %v1484_v51 }
0x17f3   :  { %v1487_v54 = vpack.c.b16 %v1486_v53, %v1486_v53 }
0x17f5   :  { %1488 = vrot.lane.b32.xlu1 %v1487_v54, %s2010_s28 }
0x1867   :  { %v1489_v55 = vpop.permute.xlu1 %1488 }
0x1868   :  { %1840 = vmatmul.mubr.msk.bf16.vlgmr.msra.gmra.mrb[28].mxu1 %vm49_vm2, %v1489_v55 }
0x193b   :  { %v1527_v56 = vpop.f32.mrb[28].mxu1 }
0x193c   :  { %v1534_v57 = vrot.slane %v1527_v56, 1  ;;  %v1535_v58 = vrot.slane %v1527_v56, 2  ;;  %v1841_v6 = vpop.f32.mrb[29].mxu1 }
0x193d   :  { %v1530_v7 = vpop.f32.mrb[30].mxu1 }
0x193e   :  { %1538 = vrot.lane.b32.xlu1 %v1535_v58, %s2011_s29  ;;  %1536 = vrot.lane.b32.xlu0 %v1534_v57, %s2011_s29  ;;  %v1842_v59 = vpop.f32.mrb[31].mxu1 }
0x1942   :  { %1548 = vrot.lane.b32.xlu1 %v1469_v24, %s2011_s29  ;;  %1546 = vrot.lane.b32.xlu0 %v1468_v20, %s2011_s29 }
0x19b0   :  { %v1539_v60 = vpop.permute.xlu1 %1538  ;;  %v1537_v1 = vpop.permute.xlu0 %1536 }
0x19b1   :  { %v1543_v61 = vadd.f32 %v2411_v32, %v1539_v60  ;;  %v1542_v5 = vadd.f32 %v2405_v31, %v1537_v1 }
0x19b3   :  { %1949 = vtanh.f32 %v1543_v61 }
0x19b4   :  { %1951 = vtanh.f32 %v1542_v5  ;;  %v1549_v11 = vpop.permute.xlu1 %1548  ;;  %v1547_v4 = vpop.permute.xlu0 %1546 }
0x19bd   :  { %v1950_v10 = vpop.eup %1949 }
0x19be   :  { %v1952_v12 = vpop.eup %1951  ;;  %v1553_v3 = vsub.f32 %v1950_v10, %v1549_v11 }
0x19bf   :  { %v1552_v14 = vsub.f32 %v1952_v12, %v1547_v4 }
0x19c0   :  { %1558 = vrot.lane.b32.xlu1 %v1553_v3, %s2011_s29 }
0x19c1   :  { %1556 = vrot.lane.b32.xlu0 %v1552_v14, %s2011_s29 }
0x1a32   :  { %v1559_v15 = vpop.permute.xlu1 %1558 }
0x1a33   :  { %v1563_v17 = vmul.f32 %v1948_v43, %v1559_v15  ;;  %v1557_v63 = vpop.permute.xlu0 %1556 }
0x1a34   :  { %v1562_v9 = vmul.f32 %v1946_v41, %v1557_v63 }
0x1a35   :  { %v1567_v8 = vrot.slane %v1563_v17, 6 }
0x1a36   :  { %v1566_v32 = vrot.slane %v1562_v9, 7 }
0x1a38   :  { %v1568_v31 = vsel %vm128_vm3, %v1567_v8, %v1566_v32 }
0x1a39   :  { %v1570_v19 = vadd.f32 %v1568_v31, %v2440_v22 }
0x1a3b   :  { %v1578_v21 = vrot.slane %v1570_v19, %v2127_v62  ;;  %1599 = vst.msk [vmem:[#allocation2] sm:$0x3] %vm23_vm1, %v1570_v19  ;;  %1600 = vst.msk [vmem:[#allocation5] sm:$0x3] %vm23_vm1, %v1570_v19 }
0x1a3c   :  { %1970 = shalt.err (!%p1967_p4)
}
0x1a3d   :  { %s1971_s20 = scalar_lea.hbm %s2505_s4, 32 }
0x1a3e   :  { %p1972_p5 = scmp.ne.s32.totalorder %s2505_s4, %s1971_s20  ;;  %p1975_p6 = scmp.lt.u32.totalorder %s1971_s20, %s2505_s4 }
0x1a40   :  { %p1977_p7 = pnand %p1975_p6, %p1972_p5 }
0x1a42   :  { %1980 = shalt.err (!%p1977_p7)
}
0x1a43   :  { %1622 = dma.vmem_to_hbm [thread:$0]  %s1620_s14, 32, %s2505_s4, [#allocation6]   ;;  %v1579_v13 = vcombine.high %v1578_v21, %v1578_v21  ;;  %v1586_v22 = vrot.slane %v1578_v21, %v2127_v62 }
0x1a44   :  { %s1981_s27 = scalar_lea.vmem %s1607_s16, 256  ;;  %p1986_p9 = scmp.lt.s32.totalorder %s1607_s16, %s1607_s16 }
0x1a45   :  { %v1593_v23 = vrot.slane %v1579_v13, %v2127_v62  ;;  %1596 = vst.msk [vmem:[#allocation3 + $0x7] sm:$0x1] %vm249_vm4, %v1586_v22  ;;  %p1982_p8 = scmp.ne.s32.totalorder %s1607_s16, %s1981_s27  ;;  %p1987_p10 = scmp.lt.s32.totalorder %s1981_s27, %s1981_s27 }
0x1a47   :  { %1597 = vst.msk [vmem:[#allocation3 + $0xf] sm:$0x1] %vm249_vm4, %v1593_v23  ;;  %p1988_p11 = por %p1987_p10, %p1986_p9 }
0x1a49   :  { %p1989_p12 = pnand %p1988_p11, %p1982_p8 }
0x1a4b   :  { %1992 = shalt.err (!%p1989_p12)
}
0x1a4c   :  { %s1993_s4 = scalar_lea.hbm %s2504_s3, 256 }
0x1a4d   :  { %p1994_p13 = scmp.ne.s32.totalorder %s2504_s3, %s1993_s4  ;;  %p1997_p0 = scmp.lt.u32.totalorder %s1993_s4, %s2504_s3 }
0x1a4f   :  { %p1999_p1 = pnand %p1997_p0, %p1994_p13 }
0x1a51   :  { %2002 = shalt.err (!%p1999_p1)
}
0x1a52   :  { %s2015_s8 = smov 128   ;;  %s2016_s9 = smov 8  }
0x1a53   :  { %1612 = dma.vmem_to_hbm [thread:$0]  %s1607_s16, 256, %s2504_s3, [#allocation4], %s2015_s8, %s2015_s8, %s2016_s9  }
0x1a54   :  { %2003 = dma.done.wait [#allocation4], 256  }
0x1a55   :  { %2004 = vsyncadd [#allocation4], 4294967040 }
0x1a56   :  { %2005 = dma.done.wait [#allocation6], 32  }
0x1a57   :  { %2006 = vsyncadd [#allocation6], 4294967264 }
0x1a58   :  { %1629 = vsyncpa [#allocation4], 1 }
0x1a59   :  { %1630 = vsyncpa [#allocation6], 1 }

</bundles_post_ra>
